<compile_context>
chip_gen: v7x
topology: tpu7x:2x2x1
jax: 0.10.0
libtpu: 0.0.40
codegen_flags: <defaults>
</compile_context>

<pallas_src>
import math
from functools import partial

import jax
import jax.numpy as jnp
from jax.experimental import pallas as pl
from jax.experimental.pallas import tpu as pltpu

_NEG = -1e30  # finite "minus infinity": avoids NaN rows if T is ever padded to a tile multiple


# ------------------------- in-kernel helpers -------------------------

def _layernorm(x, w, b, eps=1e-5):
    mu = jnp.mean(x, axis=-1, keepdims=True)
    xc = x - mu
    var = jnp.mean(xc * xc, axis=-1, keepdims=True)
    return xc * jax.lax.rsqrt(var + eps) * w + b


def _new_gelu(x):
    c = math.sqrt(2.0 / math.pi)
    return 0.5 * x * (1.0 + jnp.tanh(c * (x + 0.044715 * x * x * x)))


# ------------------------------ kernel -------------------------------

def block_kernel(n_head,
                 x_ref, ln1w_ref, ln1b_ref,
                 wqkv_ref, bqkv_ref, wprojh_ref, bproj_ref,
                 ln2w_ref, ln2b_ref,
                 wfc_ref, bfc_ref, wpr2_ref, bpr2_ref,
                 o_ref):
    x = x_ref[0]                                      # (T, C) f32, one sequence
    T, C = x.shape
    H = n_head
    D = C // H
    scale = 1.0 / math.sqrt(D)

    # ---- attention branch:  x + c_proj(SDPA(qkv(ln_1(x)))) ----
    h1 = _layernorm(x, ln1w_ref[...], ln1b_ref[...])
    # single fused qkv matmul; bf16 MXU inputs, f32 accumulation
    qkv = jnp.dot(h1.astype(jnp.bfloat16), wqkv_ref[...],
                  preferred_element_type=jnp.float32) + bqkv_ref[...]
    # fold 1/sqrt(D) into q: T*C muls instead of T*T per head on the scores
    q = qkv[:, 0 * C:1 * C] * scale
    k = qkv[:, 1 * C:2 * C]
    v = qkv[:, 2 * C:3 * C]

    # head-major (H, T, D) stacks -> one batched MXU einsum per attention matmul
    qh = jnp.stack([q[:, h * D:(h + 1) * D] for h in range(H)], axis=0).astype(jnp.bfloat16)
    kh = jnp.stack([k[:, h * D:(h + 1) * D] for h in range(H)], axis=0).astype(jnp.bfloat16)
    vh = jnp.stack([v[:, h * D:(h + 1) * D] for h in range(H)], axis=0).astype(jnp.bfloat16)

    s = jnp.einsum('htd,hsd->hts', qh, kh,
                   preferred_element_type=jnp.float32)               # (H, T, T)

    # causal mask, additive with a large finite negative (broadcast over heads)
    row = jax.lax.broadcasted_iota(jnp.int32, (T, T), 0)
    col = jax.lax.broadcasted_iota(jnp.int32, (T, T), 1)
    s = s + jnp.where(row >= col, 0.0, _NEG)

    # manual softmax: exp on EUP, divide replaced by approximate reciprocal (EUP slot)
    m = jnp.max(s, axis=-1, keepdims=True)
    e = jnp.exp(s - m)
    p = e * pl.reciprocal(jnp.sum(e, axis=-1, keepdims=True), approx=True)

    yh = jnp.einsum('hts,hsd->htd', p.astype(jnp.bfloat16), vh,
                    preferred_element_type=jnp.float32)              # (H, T, D)

    # output projection folded per head: y = sum_h yh[h] @ wproj[h*D:(h+1)*D, :]
    # (wproj is passed pre-shaped (H, D, C), so no lane-dim concatenate is needed)
    y = jnp.sum(jnp.einsum('htd,hdc->htc', yh.astype(jnp.bfloat16), wprojh_ref[...],
                           preferred_element_type=jnp.float32), axis=0) + bproj_ref[...]
    x1 = x + y

    # ---- MLP branch:  x1 + c_proj(new_gelu(c_fc(ln_2(x1)))) ----
    h2 = _layernorm(x1, ln2w_ref[...], ln2b_ref[...])
    mfc = jnp.dot(h2.astype(jnp.bfloat16), wfc_ref[...],
                  preferred_element_type=jnp.float32) + bfc_ref[...]
    mfc = _new_gelu(mfc)
    mpr = jnp.dot(mfc.astype(jnp.bfloat16), wpr2_ref[...],
                  preferred_element_type=jnp.float32) + bpr2_ref[...]

    o_ref[0] = x1 + mpr


# ------------------------------ wrapper -------------------------------

def block_forward(x, params, n_head):
    B, T, C = x.shape
    D = C // n_head
    bf16 = jnp.bfloat16

    # matmul weights shipped in bf16 (halves weight DMA bytes / resident VMEM, keeps the
    # MXU at its bf16 peak); layernorm params & biases stay f32; c_proj weight pre-shaped
    # head-major (H, D, C) so the kernel never concatenates along the lane dim.
    weights = [
        params["ln1w"], params["ln1b"],
        params["wqkv"].astype(bf16), params["bqkv"],
        params["wproj"].reshape(n_head, D, C).astype(bf16), params["bproj"],
        params["ln2w"], params["ln2b"],
        params["wfc"].astype(bf16), params["bfc"],
        params["wpr2"].astype(bf16), params["bpr2"],
    ]

    def full_spec(arr):
        nd = arr.ndim
        return pl.BlockSpec(arr.shape, lambda b, _nd=nd: (0,) * _nd)

    in_specs = [pl.BlockSpec((1, T, C), lambda b: (b, 0, 0))] + [full_spec(w) for w in weights]
    out_spec = pl.BlockSpec((1, T, C), lambda b: (b, 0, 0))

    # TODO(synk): at real model sizes (C~768+, T~1k+) tile attention flash-style over KV
    # chunks, fold >=128 query rows per grid step, and single-buffer / K-tile the
    # constant-index weight inputs so the working set fits v7x's 64 MiB VMEM.
    return pl.pallas_call(
        partial(block_kernel, n_head),
        out_shape=jax.ShapeDtypeStruct((B, T, C), jnp.float32),
        grid_spec=pltpu.PrefetchScalarGridSpec(
            num_scalar_prefetch=0,
            grid=(B,),                      # >= 2 parallel steps -> both v7x TensorCores busy
            in_specs=in_specs,
            out_specs=out_spec,
        ),
        compiler_params=pltpu.CompilerParams(
            dimension_semantics=("parallel",),
            vmem_limit_bytes=64 * 1024 * 1024,
        ),
    )(x, *weights)


# --------------------------- pure-JAX reference ---------------------------

def ref_block(x, p, n_head):
    def ln(t, w, b):
        mu = t.mean(-1, keepdims=True)
        var = ((t - mu) ** 2).mean(-1, keepdims=True)
        return (t - mu) / jnp.sqrt(var + 1e-5) * w + b

    B, T, C = x.shape
    D = C // n_head
    h1 = ln(x, p["ln1w"], p["ln1b"])
    qkv = h1 @ p["wqkv"] + p["bqkv"]
    q, k, v = jnp.split(qkv, 3, axis=-1)
    q = q.reshape(B, T, n_head, D).transpose(0, 2, 1, 3)
    k = k.reshape(B, T, n_head, D).transpose(0, 2, 1, 3)
    v = v.reshape(B, T, n_head, D).transpose(0, 2, 1, 3)
    s = jnp.einsum("bhtd,bhsd->bhts", q, k) / math.sqrt(D)
    mask = jnp.tril(jnp.ones((T, T), dtype=bool))
    s = jnp.where(mask, s, -jnp.inf)
    a = jax.nn.softmax(s, axis=-1)
    y = jnp.einsum("bhts,bhsd->bhtd", a, v).transpose(0, 2, 1, 3).reshape(B, T, C)
    x1 = x + y @ p["wproj"] + p["bproj"]
    h2 = ln(x1, p["ln2w"], p["ln2b"])
    m = h2 @ p["wfc"] + p["bfc"]
    c = math.sqrt(2.0 / math.pi)
    m = 0.5 * m * (1.0 + jnp.tanh(c * (m + 0.044715 * m ** 3)))
    return x1 + m @ p["wpr2"] + p["bpr2"]


# -------------------------------- main ---------------------------------

if __name__ == "__main__":
    # config (small, consistent with GPTConfig fields used by Block)
    B, T = 2, 8
    n_embd, n_head = 32, 4          # head_dim = 8
    dropout = 0.0                    # eval mode -> dropout is identity
    bias = True

    key = jax.random.PRNGKey(0)
    ks = jax.random.split(key, 8)

    x = jax.random.normal(ks[0], (B, T, n_embd), dtype=jnp.float32)

    def winit(k, shape):
        return (0.02 * jax.random.normal(k, shape)).astype(jnp.float32)

    params = {
        # LayerNorm params initialized like the module (ones / zeros)
        "ln1w": jnp.ones((1, n_embd), jnp.float32),
        "ln1b": jnp.zeros((1, n_embd), jnp.float32),
        "ln2w": jnp.ones((1, n_embd), jnp.float32),
        "ln2b": jnp.zeros((1, n_embd), jnp.float32),
        # attention: c_attn (C -> 3C), c_proj (C -> C); stored as [in, out]
        "wqkv": winit(ks[1], (n_embd, 3 * n_embd)),
        "bqkv": winit(ks[2], (1, 3 * n_embd)),
        "wproj": winit(ks[3], (n_embd, n_embd)),
        "bproj": winit(ks[4], (1, n_embd)),
        # MLP: c_fc (C -> 4C), c_proj (4C -> C)
        "wfc": winit(ks[5], (n_embd, 4 * n_embd)),
        "bfc": winit(ks[6], (1, 4 * n_embd)),
        "wpr2": winit(ks[7], (4 * n_embd, n_embd)),
        "bpr2": jnp.zeros((1, n_embd), jnp.float32),
    }

    out = block_forward(x, params, n_head)
    out = jax.block_until_ready(out)

    ref = ref_block(x, params, n_head)
    assert out.shape == (B, T, n_embd)
    # bf16 MXU inputs + approx reciprocal softmax -> slightly looser tolerance than pure f32
    assert jnp.allclose(out, ref, atol=5e-3, rtol=5e-3), \
        f"max abs err {jnp.max(jnp.abs(out - ref))}"

    print("KERNEL_OK")
</pallas_src>

<mosaic_0001>
module attributes {stable_mosaic.version = 11 : i64} {
  func.func @block_kernel(%arg0: i32, %arg1: memref<1x8x32xf32, #tpu.memory_space<vmem>>, %arg2: memref<1x32xf32, #tpu.memory_space<vmem>>, %arg3: memref<1x32xf32, #tpu.memory_space<vmem>>, %arg4: memref<32x96xbf16, #tpu.memory_space<vmem>>, %arg5: memref<1x96xf32, #tpu.memory_space<vmem>>, %arg6: memref<4x8x32xbf16, #tpu.memory_space<vmem>>, %arg7: memref<1x32xf32, #tpu.memory_space<vmem>>, %arg8: memref<1x32xf32, #tpu.memory_space<vmem>>, %arg9: memref<1x32xf32, #tpu.memory_space<vmem>>, %arg10: memref<32x128xbf16, #tpu.memory_space<vmem>>, %arg11: memref<1x128xf32, #tpu.memory_space<vmem>>, %arg12: memref<128x32xbf16, #tpu.memory_space<vmem>>, %arg13: memref<1x32xf32, #tpu.memory_space<vmem>>, %arg14: memref<1x8x32xf32, #tpu.memory_space<vmem>>) attributes {dimension_semantics = [#tpu.dimension_semantics<parallel>], iteration_bounds = array<i64: 2>, scalar_prefetch = 0 : i64, scratch_operands = 0 : i64, tpu.core_type = #tpu.core_type<tc>, window_params = [{transform_indices = @transform_0, window_bounds = array<i64: 1, 8, 32>}, {pipeline_mode = #tpu.pipeline_mode<synchronous>, transform_indices = @transform_1, window_bounds = array<i64: 1, 32>}, {pipeline_mode = #tpu.pipeline_mode<synchronous>, transform_indices = @transform_2, window_bounds = array<i64: 1, 32>}, {pipeline_mode = #tpu.pipeline_mode<synchronous>, transform_indices = @transform_3, window_bounds = array<i64: 32, 96>}, {pipeline_mode = #tpu.pipeline_mode<synchronous>, transform_indices = @transform_4, window_bounds = array<i64: 1, 96>}, {pipeline_mode = #tpu.pipeline_mode<synchronous>, transform_indices = @transform_5, window_bounds = array<i64: 4, 8, 32>}, {pipeline_mode = #tpu.pipeline_mode<synchronous>, transform_indices = @transform_6, window_bounds = array<i64: 1, 32>}, {pipeline_mode = #tpu.pipeline_mode<synchronous>, transform_indices = @transform_7, window_bounds = array<i64: 1, 32>}, {pipeline_mode = #tpu.pipeline_mode<synchronous>, transform_indices = @transform_8, window_bounds = array<i64: 1, 32>}, {pipeline_mode = #tpu.pipeline_mode<synchronous>, transform_indices = @transform_9, window_bounds = array<i64: 32, 128>}, {pipeline_mode = #tpu.pipeline_mode<synchronous>, transform_indices = @transform_10, window_bounds = array<i64: 1, 128>}, {pipeline_mode = #tpu.pipeline_mode<synchronous>, transform_indices = @transform_11, window_bounds = array<i64: 128, 32>}, {pipeline_mode = #tpu.pipeline_mode<synchronous>, transform_indices = @transform_12, window_bounds = array<i64: 1, 32>}, {transform_indices = @transform_13, window_bounds = array<i64: 1, 8, 32>}]} {
    %c0 = arith.constant 0 : index
    %c0_0 = arith.constant 0 : index
    %c0_1 = arith.constant 0 : index
    %0 = vector.load %arg1[%c0, %c0_0, %c0_1] : memref<1x8x32xf32, #tpu.memory_space<vmem>>, vector<1x8x32xf32>
    %1 = vector.shape_cast %0 : vector<1x8x32xf32> to vector<8x32xf32>
    %c0_2 = arith.constant 0 : index
    %c0_3 = arith.constant 0 : index
    %2 = vector.load %arg2[%c0_2, %c0_3] : memref<1x32xf32, #tpu.memory_space<vmem>>, vector<1x32xf32>
    %c0_4 = arith.constant 0 : index
    %c0_5 = arith.constant 0 : index
    %3 = vector.load %arg3[%c0_4, %c0_5] : memref<1x32xf32, #tpu.memory_space<vmem>>, vector<1x32xf32>
    %cst = arith.constant dense<0.000000e+00> : vector<8xf32>
    %4 = vector.multi_reduction <add>, %1, %cst [1] : vector<8x32xf32> to vector<8xf32>
    %5 = vector.shape_cast %4 : vector<8xf32> to vector<8x1xf32>
    %cst_6 = arith.constant 3.200000e+01 : f32
    %6 = vector.broadcast %cst_6 : f32 to vector<8x1xf32>
    %7 = arith.divf %5, %6 : vector<8x1xf32>
    %8 = vector.broadcast %7 : vector<8x1xf32> to vector<8x32xf32>
    %9 = arith.subf %1, %8 : vector<8x32xf32>
    %10 = arith.mulf %9, %9 : vector<8x32xf32>
    %cst_7 = arith.constant dense<0.000000e+00> : vector<8xf32>
    %11 = vector.multi_reduction <add>, %10, %cst_7 [1] : vector<8x32xf32> to vector<8xf32>
    %12 = vector.shape_cast %11 : vector<8xf32> to vector<8x1xf32>
    %cst_8 = arith.constant 3.200000e+01 : f32
    %13 = vector.broadcast %cst_8 : f32 to vector<8x1xf32>
    %14 = arith.divf %12, %13 : vector<8x1xf32>
    %cst_9 = arith.constant 9.99999974E-6 : f32
    %15 = vector.broadcast %cst_9 : f32 to vector<8x1xf32>
    %16 = arith.addf %14, %15 : vector<8x1xf32>
    %17 = math.rsqrt %16 : vector<8x1xf32>
    %18 = vector.broadcast %17 : vector<8x1xf32> to vector<8x32xf32>
    %19 = arith.mulf %9, %18 : vector<8x32xf32>
    %20 = vector.broadcast %2 : vector<1x32xf32> to vector<8x32xf32>
    %21 = arith.mulf %19, %20 : vector<8x32xf32>
    %22 = vector.broadcast %3 : vector<1x32xf32> to vector<8x32xf32>
    %23 = arith.addf %21, %22 : vector<8x32xf32>
    %24 = arith.truncf %23 : vector<8x32xf32> to vector<8x32xbf16>
    %c0_10 = arith.constant 0 : index
    %c0_11 = arith.constant 0 : index
    %25 = vector.load %arg4[%c0_10, %c0_11] : memref<32x96xbf16, #tpu.memory_space<vmem>>, vector<32x96xbf16>
    %cst_12 = arith.constant dense<0.000000e+00> : vector<8x96xf32>
    %26 = tpu.matmul %24, %25, %cst_12 {dimension_numbers = #tpu.dot_dimension_numbers<[1], [0], [0], [1], [0, 0, 1, 1], [], []>} : vector<8x32xbf16>, vector<32x96xbf16>, vector<8x96xf32> -> vector<8x96xf32>
    %c0_13 = arith.constant 0 : index
    %c0_14 = arith.constant 0 : index
    %27 = vector.load %arg5[%c0_13, %c0_14] : memref<1x96xf32, #tpu.memory_space<vmem>>, vector<1x96xf32>
    %28 = vector.broadcast %27 : vector<1x96xf32> to vector<8x96xf32>
    %29 = arith.addf %26, %28 : vector<8x96xf32>
    %30 = vector.extract_strided_slice %29 {offsets = [0, 0], sizes = [8, 32], strides = [1, 1]} : vector<8x96xf32> to vector<8x32xf32>
    %cst_15 = arith.constant 0.353553385 : f32
    %31 = vector.broadcast %cst_15 : f32 to vector<8x32xf32>
    %32 = arith.mulf %30, %31 : vector<8x32xf32>
    %33 = vector.extract_strided_slice %29 {offsets = [0, 32], sizes = [8, 32], strides = [1, 1]} : vector<8x96xf32> to vector<8x32xf32>
    %34 = vector.extract_strided_slice %29 {offsets = [0, 64], sizes = [8, 32], strides = [1, 1]} : vector<8x96xf32> to vector<8x32xf32>
    %35 = vector.extract_strided_slice %32 {offsets = [0, 0], sizes = [8, 8], strides = [1, 1]} : vector<8x32xf32> to vector<8x8xf32>
    %36 = vector.extract_strided_slice %32 {offsets = [0, 8], sizes = [8, 8], strides = [1, 1]} : vector<8x32xf32> to vector<8x8xf32>
    %37 = vector.extract_strided_slice %32 {offsets = [0, 16], sizes = [8, 8], strides = [1, 1]} : vector<8x32xf32> to vector<8x8xf32>
    %38 = vector.extract_strided_slice %32 {offsets = [0, 24], sizes = [8, 8], strides = [1, 1]} : vector<8x32xf32> to vector<8x8xf32>
    %39 = vector.shape_cast %35 : vector<8x8xf32> to vector<1x8x8xf32>
    %40 = vector.shape_cast %36 : vector<8x8xf32> to vector<1x8x8xf32>
    %41 = vector.shape_cast %37 : vector<8x8xf32> to vector<1x8x8xf32>
    %42 = vector.shape_cast %38 : vector<8x8xf32> to vector<1x8x8xf32>
    %43 = tpu.concatenate %39, %40, %41, %42 in 0 : vector<1x8x8xf32>, vector<1x8x8xf32>, vector<1x8x8xf32>, vector<1x8x8xf32> -> vector<4x8x8xf32>
    %44 = arith.truncf %43 : vector<4x8x8xf32> to vector<4x8x8xbf16>
    %45 = vector.extract_strided_slice %33 {offsets = [0, 0], sizes = [8, 8], strides = [1, 1]} : vector<8x32xf32> to vector<8x8xf32>
    %46 = vector.extract_strided_slice %33 {offsets = [0, 8], sizes = [8, 8], strides = [1, 1]} : vector<8x32xf32> to vector<8x8xf32>
    %47 = vector.extract_strided_slice %33 {offsets = [0, 16], sizes = [8, 8], strides = [1, 1]} : vector<8x32xf32> to vector<8x8xf32>
    %48 = vector.extract_strided_slice %33 {offsets = [0, 24], sizes = [8, 8], strides = [1, 1]} : vector<8x32xf32> to vector<8x8xf32>
    %49 = vector.shape_cast %45 : vector<8x8xf32> to vector<1x8x8xf32>
    %50 = vector.shape_cast %46 : vector<8x8xf32> to vector<1x8x8xf32>
    %51 = vector.shape_cast %47 : vector<8x8xf32> to vector<1x8x8xf32>
    %52 = vector.shape_cast %48 : vector<8x8xf32> to vector<1x8x8xf32>
    %53 = tpu.concatenate %49, %50, %51, %52 in 0 : vector<1x8x8xf32>, vector<1x8x8xf32>, vector<1x8x8xf32>, vector<1x8x8xf32> -> vector<4x8x8xf32>
    %54 = arith.truncf %53 : vector<4x8x8xf32> to vector<4x8x8xbf16>
    %55 = vector.extract_strided_slice %34 {offsets = [0, 0], sizes = [8, 8], strides = [1, 1]} : vector<8x32xf32> to vector<8x8xf32>
    %56 = vector.extract_strided_slice %34 {offsets = [0, 8], sizes = [8, 8], strides = [1, 1]} : vector<8x32xf32> to vector<8x8xf32>
    %57 = vector.extract_strided_slice %34 {offsets = [0, 16], sizes = [8, 8], strides = [1, 1]} : vector<8x32xf32> to vector<8x8xf32>
    %58 = vector.extract_strided_slice %34 {offsets = [0, 24], sizes = [8, 8], strides = [1, 1]} : vector<8x32xf32> to vector<8x8xf32>
    %59 = vector.shape_cast %55 : vector<8x8xf32> to vector<1x8x8xf32>
    %60 = vector.shape_cast %56 : vector<8x8xf32> to vector<1x8x8xf32>
    %61 = vector.shape_cast %57 : vector<8x8xf32> to vector<1x8x8xf32>
    %62 = vector.shape_cast %58 : vector<8x8xf32> to vector<1x8x8xf32>
    %63 = tpu.concatenate %59, %60, %61, %62 in 0 : vector<1x8x8xf32>, vector<1x8x8xf32>, vector<1x8x8xf32>, vector<1x8x8xf32> -> vector<4x8x8xf32>
    %64 = arith.truncf %63 : vector<4x8x8xf32> to vector<4x8x8xbf16>
    "tpu.trace_start"() <{level = 10 : i32, message = "htd,hsd->hts"}> : () -> ()
    %cst_16 = arith.constant dense<0.000000e+00> : vector<4x8x8xf32>
    %65 = tpu.matmul %44, %54, %cst_16 {dimension_numbers = #tpu.dot_dimension_numbers<[2], [2], [1], [1], [0, 0, 0, 1, 1, 1], [0], [0]>} : vector<4x8x8xbf16>, vector<4x8x8xbf16>, vector<4x8x8xf32> -> vector<4x8x8xf32>
    "tpu.trace_stop"() : () -> ()
    %66 = tpu.iota {dimensions = array<i32: 0>} : vector<8x8xi32>
    %67 = tpu.iota {dimensions = array<i32: 1>} : vector<8x8xi32>
    %68 = arith.cmpi sge, %66, %67 : vector<8x8xi32>
    %cst_17 = arith.constant 0.000000e+00 : f32
    %cst_18 = arith.constant -1.000000e+30 : f32
    %69 = vector.broadcast %cst_17 : f32 to vector<8x8xf32>
    %70 = vector.broadcast %cst_18 : f32 to vector<8x8xf32>
    %71 = arith.select %68, %69, %70 : vector<8x8xi1>, vector<8x8xf32>
    %72 = vector.shape_cast %71 : vector<8x8xf32> to vector<1x8x8xf32>
    %73 = vector.broadcast %72 : vector<1x8x8xf32> to vector<4x8x8xf32>
    %74 = arith.addf %65, %73 : vector<4x8x8xf32>
    %cst_19 = arith.constant dense<0xFF800000> : vector<4x8xf32>
    %75 = vector.multi_reduction <maximumf>, %74, %cst_19 [2] : vector<4x8x8xf32> to vector<4x8xf32>
    %76 = vector.shape_cast %75 : vector<4x8xf32> to vector<4x8x1xf32>
    %77 = vector.broadcast %76 : vector<4x8x1xf32> to vector<4x8x8xf32>
    %78 = arith.subf %74, %77 : vector<4x8x8xf32>
    %79 = math.exp %78 : vector<4x8x8xf32>
    %cst_20 = arith.constant dense<0.000000e+00> : vector<4x8xf32>
    %80 = vector.multi_reduction <add>, %79, %cst_20 [2] : vector<4x8x8xf32> to vector<4x8xf32>
    %81 = vector.shape_cast %80 : vector<4x8xf32> to vector<4x8x1xf32>
    %82 = tpu.reciprocal %81 {approx = true} : vector<4x8x1xf32> -> vector<4x8x1xf32>
    %83 = vector.broadcast %82 : vector<4x8x1xf32> to vector<4x8x8xf32>
    %84 = arith.mulf %79, %83 : vector<4x8x8xf32>
    %85 = arith.truncf %84 : vector<4x8x8xf32> to vector<4x8x8xbf16>
    "tpu.trace_start"() <{level = 10 : i32, message = "hts,hsd->htd"}> : () -> ()
    %cst_21 = arith.constant dense<0.000000e+00> : vector<4x8x8xf32>
    %86 = tpu.matmul %85, %64, %cst_21 {dimension_numbers = #tpu.dot_dimension_numbers<[2], [1], [1], [2], [0, 0, 0, 1, 1, 2], [0], [0]>} : vector<4x8x8xbf16>, vector<4x8x8xbf16>, vector<4x8x8xf32> -> vector<4x8x8xf32>
    "tpu.trace_stop"() : () -> ()
    %87 = arith.truncf %86 : vector<4x8x8xf32> to vector<4x8x8xbf16>
    %c0_22 = arith.constant 0 : index
    %c0_23 = arith.constant 0 : index
    %c0_24 = arith.constant 0 : index
    %88 = vector.load %arg6[%c0_22, %c0_23, %c0_24] : memref<4x8x32xbf16, #tpu.memory_space<vmem>>, vector<4x8x32xbf16>
    "tpu.trace_start"() <{level = 10 : i32, message = "htd,hdc->htc"}> : () -> ()
    %cst_25 = arith.constant dense<0.000000e+00> : vector<4x8x32xf32>
    %89 = tpu.matmul %87, %88, %cst_25 {dimension_numbers = #tpu.dot_dimension_numbers<[2], [1], [1], [2], [0, 0, 0, 1, 1, 2], [0], [0]>} : vector<4x8x8xbf16>, vector<4x8x32xbf16>, vector<4x8x32xf32> -> vector<4x8x32xf32>
    "tpu.trace_stop"() : () -> ()
    %cst_26 = arith.constant dense<0.000000e+00> : vector<8x32xf32>
    %90 = vector.multi_reduction <add>, %89, %cst_26 [0] : vector<4x8x32xf32> to vector<8x32xf32>
    %c0_27 = arith.constant 0 : index
    %c0_28 = arith.constant 0 : index
    %91 = vector.load %arg7[%c0_27, %c0_28] : memref<1x32xf32, #tpu.memory_space<vmem>>, vector<1x32xf32>
    %92 = vector.broadcast %91 : vector<1x32xf32> to vector<8x32xf32>
    %93 = arith.addf %90, %92 : vector<8x32xf32>
    %94 = arith.addf %1, %93 : vector<8x32xf32>
    %c0_29 = arith.constant 0 : index
    %c0_30 = arith.constant 0 : index
    %95 = vector.load %arg8[%c0_29, %c0_30] : memref<1x32xf32, #tpu.memory_space<vmem>>, vector<1x32xf32>
    %c0_31 = arith.constant 0 : index
    %c0_32 = arith.constant 0 : index
    %96 = vector.load %arg9[%c0_31, %c0_32] : memref<1x32xf32, #tpu.memory_space<vmem>>, vector<1x32xf32>
    %cst_33 = arith.constant dense<0.000000e+00> : vector<8xf32>
    %97 = vector.multi_reduction <add>, %94, %cst_33 [1] : vector<8x32xf32> to vector<8xf32>
    %98 = vector.shape_cast %97 : vector<8xf32> to vector<8x1xf32>
    %cst_34 = arith.constant 3.200000e+01 : f32
    %99 = vector.broadcast %cst_34 : f32 to vector<8x1xf32>
    %100 = arith.divf %98, %99 : vector<8x1xf32>
    %101 = vector.broadcast %100 : vector<8x1xf32> to vector<8x32xf32>
    %102 = arith.subf %94, %101 : vector<8x32xf32>
    %103 = arith.mulf %102, %102 : vector<8x32xf32>
    %cst_35 = arith.constant dense<0.000000e+00> : vector<8xf32>
    %104 = vector.multi_reduction <add>, %103, %cst_35 [1] : vector<8x32xf32> to vector<8xf32>
    %105 = vector.shape_cast %104 : vector<8xf32> to vector<8x1xf32>
    %cst_36 = arith.constant 3.200000e+01 : f32
    %106 = vector.broadcast %cst_36 : f32 to vector<8x1xf32>
    %107 = arith.divf %105, %106 : vector<8x1xf32>
    %cst_37 = arith.constant 9.99999974E-6 : f32
    %108 = vector.broadcast %cst_37 : f32 to vector<8x1xf32>
    %109 = arith.addf %107, %108 : vector<8x1xf32>
    %110 = math.rsqrt %109 : vector<8x1xf32>
    %111 = vector.broadcast %110 : vector<8x1xf32> to vector<8x32xf32>
    %112 = arith.mulf %102, %111 : vector<8x32xf32>
    %113 = vector.broadcast %95 : vector<1x32xf32> to vector<8x32xf32>
    %114 = arith.mulf %112, %113 : vector<8x32xf32>
    %115 = vector.broadcast %96 : vector<1x32xf32> to vector<8x32xf32>
    %116 = arith.addf %114, %115 : vector<8x32xf32>
    %117 = arith.truncf %116 : vector<8x32xf32> to vector<8x32xbf16>
    %c0_38 = arith.constant 0 : index
    %c0_39 = arith.constant 0 : index
    %118 = vector.load %arg10[%c0_38, %c0_39] : memref<32x128xbf16, #tpu.memory_space<vmem>>, vector<32x128xbf16>
    %cst_40 = arith.constant dense<0.000000e+00> : vector<8x128xf32>
    %119 = tpu.matmul %117, %118, %cst_40 {dimension_numbers = #tpu.dot_dimension_numbers<[1], [0], [0], [1], [0, 0, 1, 1], [], []>} : vector<8x32xbf16>, vector<32x128xbf16>, vector<8x128xf32> -> vector<8x128xf32>
    %c0_41 = arith.constant 0 : index
    %c0_42 = arith.constant 0 : index
    %120 = vector.load %arg11[%c0_41, %c0_42] : memref<1x128xf32, #tpu.memory_space<vmem>>, vector<1x128xf32>
    %121 = vector.broadcast %120 : vector<1x128xf32> to vector<8x128xf32>
    %122 = arith.addf %119, %121 : vector<8x128xf32>
    %cst_43 = arith.constant 5.000000e-01 : f32
    %123 = vector.broadcast %cst_43 : f32 to vector<8x128xf32>
    %124 = arith.mulf %123, %122 : vector<8x128xf32>
    %cst_44 = arith.constant 4.471500e-02 : f32
    %125 = vector.broadcast %cst_44 : f32 to vector<8x128xf32>
    %126 = arith.mulf %125, %122 : vector<8x128xf32>
    %127 = arith.mulf %126, %122 : vector<8x128xf32>
    %128 = arith.mulf %127, %122 : vector<8x128xf32>
    %129 = arith.addf %122, %128 : vector<8x128xf32>
    %cst_45 = arith.constant 0.797884583 : f32
    %130 = vector.broadcast %cst_45 : f32 to vector<8x128xf32>
    %131 = arith.mulf %130, %129 : vector<8x128xf32>
    %132 = math.tanh %131 : vector<8x128xf32>
    %cst_46 = arith.constant 1.000000e+00 : f32
    %133 = vector.broadcast %cst_46 : f32 to vector<8x128xf32>
    %134 = arith.addf %133, %132 : vector<8x128xf32>
    %135 = arith.mulf %124, %134 : vector<8x128xf32>
    %136 = arith.truncf %135 : vector<8x128xf32> to vector<8x128xbf16>
    %c0_47 = arith.constant 0 : index
    %c0_48 = arith.constant 0 : index
    %137 = vector.load %arg12[%c0_47, %c0_48] : memref<128x32xbf16, #tpu.memory_space<vmem>>, vector<128x32xbf16>
    %cst_49 = arith.constant dense<0.000000e+00> : vector<8x32xf32>
    %138 = tpu.matmul %136, %137, %cst_49 {dimension_numbers = #tpu.dot_dimension_numbers<[1], [0], [0], [1], [0, 0, 1, 1], [], []>} : vector<8x128xbf16>, vector<128x32xbf16>, vector<8x32xf32> -> vector<8x32xf32>
    %c0_50 = arith.constant 0 : index
    %c0_51 = arith.constant 0 : index
    %139 = vector.load %arg13[%c0_50, %c0_51] : memref<1x32xf32, #tpu.memory_space<vmem>>, vector<1x32xf32>
    %140 = vector.broadcast %139 : vector<1x32xf32> to vector<8x32xf32>
    %141 = arith.addf %138, %140 : vector<8x32xf32>
    %142 = arith.addf %94, %141 : vector<8x32xf32>
    %c0_52 = arith.constant 0 : index
    %c0_53 = arith.constant 0 : index
    %c0_54 = arith.constant 0 : index
    %143 = vector.load %arg14[%c0_52, %c0_53, %c0_54] : memref<1x8x32xf32, #tpu.memory_space<vmem>>, vector<1x8x32xf32>
    %144 = vector.shape_cast %143 : vector<1x8x32xf32> to vector<8x32xf32>
    %145 = vector.shape_cast %142 : vector<8x32xf32> to vector<1x8x32xf32>
    tpu.vector_store %arg14[%c0_52, %c0_53, %c0_54], %145 {strides = array<i32>} : memref<1x8x32xf32, #tpu.memory_space<vmem>>, vector<1x8x32xf32>,
    return
  }
  func.func @transform_0(%arg0: i32) -> (i32, i32, i32) {
    %c0_i32 = arith.constant 0 : i32
    %c0_i32_0 = arith.constant 0 : i32
    %c0_i32_1 = arith.constant 0 : i32
    return %arg0, %c0_i32, %c0_i32_0 : i32, i32, i32
  }
  func.func @transform_1(%arg0: i32) -> (i32, i32) {
    %c0_i32 = arith.constant 0 : i32
    %c0_i32_0 = arith.constant 0 : i32
    %c0_i32_1 = arith.constant 0 : i32
    return %c0_i32, %c0_i32_0 : i32, i32
  }
  func.func @transform_2(%arg0: i32) -> (i32, i32) {
    %c0_i32 = arith.constant 0 : i32
    %c0_i32_0 = arith.constant 0 : i32
    %c0_i32_1 = arith.constant 0 : i32
    return %c0_i32, %c0_i32_0 : i32, i32
  }
  func.func @transform_3(%arg0: i32) -> (i32, i32) {
    %c0_i32 = arith.constant 0 : i32
    %c0_i32_0 = arith.constant 0 : i32
    %c0_i32_1 = arith.constant 0 : i32
    return %c0_i32, %c0_i32_0 : i32, i32
  }
  func.func @transform_4(%arg0: i32) -> (i32, i32) {
    %c0_i32 = arith.constant 0 : i32
    %c0_i32_0 = arith.constant 0 : i32
    %c0_i32_1 = arith.constant 0 : i32
    return %c0_i32, %c0_i32_0 : i32, i32
  }
  func.func @transform_5(%arg0: i32) -> (i32, i32, i32) {
    %c0_i32 = arith.constant 0 : i32
    %c0_i32_0 = arith.constant 0 : i32
    %c0_i32_1 = arith.constant 0 : i32
    %c0_i32_2 = arith.constant 0 : i32
    return %c0_i32, %c0_i32_0, %c0_i32_1 : i32, i32, i32
  }
  func.func @transform_6(%arg0: i32) -> (i32, i32) {
    %c0_i32 = arith.constant 0 : i32
    %c0_i32_0 = arith.constant 0 : i32
    %c0_i32_1 = arith.constant 0 : i32
    return %c0_i32, %c0_i32_0 : i32, i32
  }
  func.func @transform_7(%arg0: i32) -> (i32, i32) {
    %c0_i32 = arith.constant 0 : i32
    %c0_i32_0 = arith.constant 0 : i32
    %c0_i32_1 = arith.constant 0 : i32
    return %c0_i32, %c0_i32_0 : i32, i32
  }
  func.func @transform_8(%arg0: i32) -> (i32, i32) {
    %c0_i32 = arith.constant 0 : i32
    %c0_i32_0 = arith.constant 0 : i32
    %c0_i32_1 = arith.constant 0 : i32
    return %c0_i32, %c0_i32_0 : i32, i32
  }
  func.func @transform_9(%arg0: i32) -> (i32, i32) {
    %c0_i32 = arith.constant 0 : i32
    %c0_i32_0 = arith.constant 0 : i32
    %c0_i32_1 = arith.constant 0 : i32
    return %c0_i32, %c0_i32_0 : i32, i32
  }
  func.func @transform_10(%arg0: i32) -> (i32, i32) {
    %c0_i32 = arith.constant 0 : i32
    %c0_i32_0 = arith.constant 0 : i32
    %c0_i32_1 = arith.constant 0 : i32
    return %c0_i32, %c0_i32_0 : i32, i32
  }
  func.func @transform_11(%arg0: i32) -> (i32, i32) {
    %c0_i32 = arith.constant 0 : i32
    %c0_i32_0 = arith.constant 0 : i32
    %c0_i32_1 = arith.constant 0 : i32
    return %c0_i32, %c0_i32_0 : i32, i32
  }
  func.func @transform_12(%arg0: i32) -> (i32, i32) {
    %c0_i32 = arith.constant 0 : i32
    %c0_i32_0 = arith.constant 0 : i32
    %c0_i32_1 = arith.constant 0 : i32
    return %c0_i32, %c0_i32_0 : i32, i32
  }
  func.func @transform_13(%arg0: i32) -> (i32, i32, i32) {
    %c0_i32 = arith.constant 0 : i32
    %c0_i32_0 = arith.constant 0 : i32
    %c0_i32_1 = arith.constant 0 : i32
    return %arg0, %c0_i32, %c0_i32_0 : i32, i32, i32
  }
}

</mosaic_0001>

<bundles_post_ra>
// kernel: tpu_custom_call.1
= control target key start
LH: loop header
LB: loop body
LE: loop exit
PB: predicated region body
PF: predicated region fallthrough
CT: control target
= control target key end

     0   :  { %s3376_s0 = inlined_call_operand.hbm [shape: f32[2,8,32], index: 0, kind: input, shape index: {}]   ;;  %s3377_s1 = inlined_call_operand.hbm [shape: f32[1,32], index: 1, kind: input, shape index: {}]   ;;  %s3378_s2 = inlined_call_operand.hbm [shape: f32[1,32], index: 2, kind: input, shape index: {}]   ;;  %s3379_s3 = inlined_call_operand.hbm [shape: bf16[32,96], index: 3, kind: input, shape index: {}]   ;;  %s3380_s4 = inlined_call_operand.hbm [shape: f32[1,96], index: 4, kind: input, shape index: {}]   ;;  %s3381_s5 = inlined_call_operand.hbm [shape: bf16[4,8,32], index: 5, kind: input, shape index: {}]   ;;  %s3382_s6 = inlined_call_operand.hbm [shape: f32[1,32], index: 6, kind: input, shape index: {}]   ;;  %s3383_s7 = inlined_call_operand.hbm [shape: f32[1,32], index: 7, kind: input, shape index: {}]   ;;  %s3384_s8 = inlined_call_operand.hbm [shape: f32[1,32], index: 8, kind: input, shape index: {}]   ;;  %s3385_s9 = inlined_call_operand.hbm [shape: bf16[32,128], index: 9, kind: input, shape index: {}]   ;;  %s3386_s10 = inlined_call_operand.hbm [shape: f32[1,128], index: 10, kind: input, shape index: {}]   ;;  %s3387_s11 = inlined_call_operand.hbm [shape: bf16[128,32], index: 11, kind: input, shape index: {}]   ;;  %s3388_s12 = inlined_call_operand.hbm [shape: f32[1,32], index: 12, kind: input, shape index: {}]   ;;  %s3389_s13 = inlined_call_operand.hbm [shape: f32[2,8,32], index: 13, kind: output, shape index: {}]  }
   0x1   :  { %3399 = sst [smem:[#allocation34_spill]] %s3376_s0 }
   0x2   :  { %3400 = sst [smem:[#allocation35_spill]] %s3377_s1 }
   0x3   :  { %3401 = sst [smem:[#allocation36_spill]] %s3378_s2 }
   0x4   :  { %3402 = sst [smem:[#allocation37_spill]] %s3379_s3 }
   0x5   :  { %3403 = sst [smem:[#allocation38_spill]] %s3389_s13 }
   0x6   :  { %18 = vsyncpa [#allocation3], 0 }
   0x7   :  { %20 = vsyncpa [#allocation3 + $0x1], 0 }
   0x8   :  { %21 = vsyncpa [#allocation6], 0 }
   0x9   :  { %22 = vsyncpa [#allocation9], 0 }
   0xa   :  { %23 = vsyncpa [#allocation12], 0 }
   0xb   :  { %24 = vsyncpa [#allocation15], 0 }
   0xc   :  { %25 = vsyncpa [#allocation18], 0 }
   0xd   :  { %26 = vsyncpa [#allocation21], 0 }
   0xe   :  { %27 = vsyncpa [#allocation4], 0 }
   0xf   :  { %29 = vsyncpa [#allocation4 + $0x1], 0  ;;  %s2792_s25 = smov 0   ;;  %s2794_s26 = smov 0  }
  0x10   :  { %s2796_s27 = smov 0   ;;  %s2798_s28 = smov 0  }
  0x11 LB: > { %s2698_s29 = smov [#allocation5]   ;;  %s2813_s14 = sadd.s32 4294967295, %s2696_s28   ;;  %s2696_s28 = sphi %s2798_s28, %s3442_s28   ;;  %s2692_s27 = sphi %s2796_s27, %s3441_s27   ;;  %s2688_s26 = sphi %s2794_s26, %s3440_s26   ;;  %s2684_s25 = sphi %s2792_s25, %s3439_s25  }
  0x12   : > { %s357_s30 = sshll.u32 %s2698_s29, 4  ;;  %3404 = sst [smem:[#allocation32_spill]] %s2813_s14  ;;  %s2818_s30 = int_to_ptr.vmem [resolvable:$true] %s357_s30 }
  0x13   : > { %p1813_p0 = scmp.ge.s32.totalorder %s2696_s28, 1  ;;  %p3396_p1 = scmp.eq.s32.totalorder %s2813_s14, 0 }
  0x14   : > { %p344_p2 = scmp.lt.s32.totalorder %s2696_s28, 3  ;;  %s2699_s16 = smov [#allocation8]  }
  0x15   : > { %s378_s17 = sshll.u32 %s2699_s16, 4  ;;  %s2700_s19 = smov [#allocation11]   ;;  %s2827_s17 = int_to_ptr.vmem [resolvable:$true] %s378_s17 }
  0x16   : > { %p2820_p3 = pnand %p1813_p0, %p344_p2  ;;  %s402_s20 = sshll.u32 %s2700_s19, 4  ;;  %s2835_s20 = int_to_ptr.vmem [resolvable:$true] %s402_s20 }
  0x17   : > { %s3408_s1 = sld [smem:[#allocation35_spill]] }
  0x18   : > { %s3405_s15 = scalar_select %p2820_p3, 1, 0 }
  0x19   : > { %p2081_p5 = pneg %p2820_p3 }
  0x1a   : > { %3406 = sst [smem:[#allocation33_spill]] %s3405_s15 }
  0x1b   : > { %p2831_p6 = pnand %p2081_p5, %p3396_p1 }
  0x1d   : > { %s2240_s23 = scalar_lea.hbm %s3408_s1, 16  ;;  %p2845_p8 = pneg %p2831_p6 }
  0x1e   : > { %p2241_p7 = scmp.ne.s32.totalorder %s3408_s1, %s2240_s23  ;;  %p2247_p11 = scmp.lt.u32.totalorder %s2240_s23, %s3408_s1 }
  0x20   : > { %p2243_p9 = pnand %p2845_p8, %p2241_p7 }
  0x22   : > { %p2244_p10 = pneg %p2243_p9 }
  0x24   : > { %p2249_p12 = pnand %p2247_p11, %p2244_p10 }
  0x26   : > { %2252 = shalt.err (!%p2249_p12)
}
  0x27   : > { %s2253_s21 = scalar_lea.vmem %s2818_s30, 16  ;;  %s2260_s22 = scalar_lea.vmem %s2818_s30, 32 }
  0x28   : > { %p2254_p13 = scmp.ne.s32.totalorder %s2818_s30, %s2253_s21  ;;  %p2261_p5 = scmp.lt.s32.totalorder %s2818_s30, %s2818_s30 }
  0x29   : > { %p2262_p7 = scmp.lt.s32.totalorder %s2260_s22, %s2253_s21 }
  0x2a   : > { %p2256_p0 = pnand %p2254_p13, %p2845_p8 }
  0x2b   : > { %p2263_p9 = por %p2262_p7, %p2261_p5 }
  0x2c   : > { %p2257_p2 = pneg %p2256_p0 }
  0x2e   : > { %p2264_p4 = pnand %p2263_p9, %p2257_p2 }
  0x30   : > { %2267 = shalt.err (!%p2264_p4)
}
  0x31   : > { %2084 = dma.hbm_to_vmem [thread:$0]  (!%p2831_p6), %s3408_s1, 16, %s2818_s30, [#allocation6]  }
  0x32   : > { %s3410_s3 = sld [smem:[#allocation37_spill]] }
  0x38   : > { %s2268_s19 = scalar_lea.hbm %s3410_s3, 256 }
  0x39   : > { %p2269_p10 = scmp.ne.s32.totalorder %s3410_s3, %s2268_s19  ;;  %p2275_p4 = scmp.lt.u32.totalorder %s2268_s19, %s3410_s3 }
  0x3b   : > { %p2271_p11 = pnand %p2269_p10, %p2845_p8 }
  0x3d   : > { %p2272_p12 = pneg %p2271_p11 }
  0x3f   : > { %p2277_p13 = pnand %p2275_p4, %p2272_p12 }
  0x41   : > { %2280 = shalt.err (!%p2277_p13)
}
  0x42   : > { %s2281_s30 = scalar_lea.vmem %s2827_s17, 256  ;;  %p2289_p7 = scmp.lt.s32.totalorder %s2827_s17, %s2827_s17 }
  0x43   : > { %p2282_p0 = scmp.ne.s32.totalorder %s2827_s17, %s2281_s30  ;;  %p2290_p9 = scmp.lt.s32.totalorder %s2281_s30, %s2281_s30 }
  0x45   : > { %p2284_p2 = pnand %p2282_p0, %p2845_p8  ;;  %p2291_p10 = por %p2290_p9, %p2289_p7 }
  0x47   : > { %p2285_p5 = pneg %p2284_p2 }
  0x49   : > { %p2292_p11 = pnand %p2291_p10, %p2285_p5 }
  0x4b   : > { %2295 = shalt.err (!%p2292_p11)
}
  0x4c   : > { %s2701_s0 = smov 64   ;;  %s2702_s15 = smov 4  }
  0x4d   : > { %2090 = dma.hbm_to_vmem [thread:$0]  (!%p2831_p6), %s3410_s3, 256, %s2827_s17, [#allocation9], %s2701_s0, %s2701_s0, %s2702_s15  }
  0x4e   : > { %s2296_s19 = scalar_lea.hbm %s3381_s5, 256 }
  0x4f   : > { %p2297_p12 = scmp.ne.s32.totalorder %s3381_s5, %s2296_s19  ;;  %p2303_p0 = scmp.lt.u32.totalorder %s2296_s19, %s3381_s5 }
  0x51   : > { %p2299_p4 = pnand %p2297_p12, %p2845_p8 }
  0x53   : > { %p2300_p13 = pneg %p2299_p4 }
  0x55   : > { %p2305_p2 = pnand %p2303_p0, %p2300_p13 }
  0x57   : > { %2308 = shalt.err (!%p2305_p2)
}
  0x58   : > { %s2309_s17 = scalar_lea.vmem %s2835_s20, 256  ;;  %p2317_p10 = scmp.lt.s32.totalorder %s2835_s20, %s2835_s20 }
  0x59   : > { %p2310_p5 = scmp.ne.s32.totalorder %s2835_s20, %s2309_s17  ;;  %p2318_p11 = scmp.lt.s32.totalorder %s2309_s17, %s2309_s17 }
  0x5b   : > { %p2312_p7 = pnand %p2310_p5, %p2845_p8  ;;  %p2319_p12 = por %p2318_p11, %p2317_p10 }
  0x5d   : > { %p2313_p9 = pneg %p2312_p7 }
  0x5f   : > { %p2320_p4 = pnand %p2319_p12, %p2313_p9 }
  0x61   : > { %2323 = shalt.err (!%p2320_p4)
}
  0x62   : > { %2096 = dma.hbm_to_vmem [thread:$0]  (!%p2831_p6), %s3381_s5, 256, %s2835_s20, [#allocation12], %s2701_s0, %s2701_s0, %s2702_s15  }
  0x63   : > { %s2703_s23 = smov [#allocation14]   ;;  %s2704_s29 = smov [#allocation17]  }
  0x64   : > { %s427_s24 = sshll.u32 %s2703_s23, 4  ;;  %s448_s19 = sshll.u32 %s2704_s29, 4  ;;  %s428_s24 = int_to_ptr.vmem [resolvable:$true] %s427_s24  ;;  %s449_s19 = int_to_ptr.vmem [resolvable:$true] %s448_s19 }
  0x65   : > { %s2324_s30 = scalar_lea.hbm %s3383_s7, 16 }
  0x66   : > { %p2325_p13 = scmp.ne.s32.totalorder %s3383_s7, %s2324_s30  ;;  %p2331_p5 = scmp.lt.u32.totalorder %s2324_s30, %s3383_s7 }
  0x68   : > { %p2327_p0 = pnand %p2325_p13, %p2845_p8 }
  0x6a   : > { %p2328_p2 = pneg %p2327_p0 }
  0x6c   : > { %p2333_p7 = pnand %p2331_p5, %p2328_p2 }
  0x6e   : > { %2336 = shalt.err (!%p2333_p7)
}
  0x6f   : > { %s2337_s20 = scalar_lea.vmem %s428_s24, 16  ;;  %s2344_s13 = scalar_lea.vmem %s428_s24, 32 }
  0x70   : > { %p2338_p9 = scmp.ne.s32.totalorder %s428_s24, %s2337_s20  ;;  %p2345_p12 = scmp.lt.s32.totalorder %s428_s24, %s428_s24 }
  0x71   : > { %p2346_p4 = scmp.lt.s32.totalorder %s2344_s13, %s2337_s20 }
  0x72   : > { %p2340_p10 = pnand %p2338_p9, %p2845_p8 }
  0x73   : > { %p2347_p1 = por %p2346_p4, %p2345_p12 }
  0x74   : > { %p2341_p11 = pneg %p2340_p10 }
  0x76   : > { %p2348_p3 = pnand %p2347_p1, %p2341_p11 }
  0x78   : > { %2351 = shalt.err (!%p2348_p3)
}
  0x79   : > { %2102 = dma.hbm_to_vmem [thread:$0]  (!%p2831_p6), %s3383_s7, 16, %s428_s24, [#allocation15]  }
  0x7a   : > { %s2352_s21 = scalar_lea.hbm %s3385_s9, 256 }
  0x7b   : > { %p2353_p13 = scmp.ne.s32.totalorder %s3385_s9, %s2352_s21  ;;  %p2359_p3 = scmp.lt.u32.totalorder %s2352_s21, %s3385_s9 }
  0x7d   : > { %p2355_p0 = pnand %p2353_p13, %p2845_p8 }
  0x7f   : > { %p2356_p1 = pneg %p2355_p0 }
  0x81   : > { %p2361_p2 = pnand %p2359_p3, %p2356_p1 }
  0x83   : > { %2364 = shalt.err (!%p2361_p2)
}
  0x84   : > { %s2365_s20 = scalar_lea.vmem %s449_s19, 256  ;;  %p2373_p10 = scmp.lt.s32.totalorder %s449_s19, %s449_s19 }
  0x85   : > { %p2366_p5 = scmp.ne.s32.totalorder %s449_s19, %s2365_s20  ;;  %p2374_p11 = scmp.lt.s32.totalorder %s2365_s20, %s2365_s20 }
  0x87   : > { %p2368_p7 = pnand %p2366_p5, %p2845_p8  ;;  %p2375_p12 = por %p2374_p11, %p2373_p10 }
  0x89   : > { %p2369_p9 = pneg %p2368_p7 }
  0x8b   : > { %p2376_p4 = pnand %p2375_p12, %p2369_p9 }
  0x8d   : > { %2379 = shalt.err (!%p2376_p4)
}
  0x8e   : > { %2108 = dma.hbm_to_vmem [thread:$0]  (!%p2831_p6), %s3385_s9, 256, %s449_s19, [#allocation18], %s2701_s0, %s2701_s0, %s2702_s15  }
  0x8f   : > { %s2705_s3 = smov [#allocation20]   ;;  %s2706_s14 = smov [#allocation7]  }
  0x90   : > { %s472_s23 = sshll.u32 %s2705_s3, 4  ;;  %s368_s29 = sshll.u32 %s2706_s14, 4  ;;  %s473_s23 = int_to_ptr.vmem [resolvable:$true] %s472_s23  ;;  %s369_s29 = int_to_ptr.vmem [resolvable:$true] %s368_s29 }
  0x91   : > { %s2380_s30 = scalar_lea.hbm %s3387_s11, 1024 }
  0x92   : > { %p2381_p13 = scmp.ne.s32.totalorder %s3387_s11, %s2380_s30  ;;  %p2387_p3 = scmp.lt.u32.totalorder %s2380_s30, %s3387_s11 }
  0x94   : > { %p2383_p0 = pnand %p2381_p13, %p2845_p8 }
  0x96   : > { %p2384_p1 = pneg %p2383_p0 }
  0x98   : > { %p2389_p2 = pnand %p2387_p3, %p2384_p1 }
  0x9a   : > { %2392 = shalt.err (!%p2389_p2)
}
  0x9b   : > { %s2393_s19 = scalar_lea.vmem %s473_s23, 1024  ;;  %p2401_p10 = scmp.lt.s32.totalorder %s473_s23, %s473_s23 }
  0x9c   : > { %p2394_p5 = scmp.ne.s32.totalorder %s473_s23, %s2393_s19  ;;  %p2402_p11 = scmp.lt.s32.totalorder %s2393_s19, %s2393_s19 }
  0x9e   : > { %p2396_p7 = pnand %p2394_p5, %p2845_p8  ;;  %p2403_p12 = por %p2402_p11, %p2401_p10 }
  0xa0   : > { %p2397_p9 = pneg %p2396_p7 }
  0xa2   : > { %p2404_p4 = pnand %p2403_p12, %p2397_p9 }
  0xa4   : > { %2407 = shalt.err (!%p2404_p4)
}
  0xa5   : > { %2114 = dma.hbm_to_vmem [thread:$0]  (!%p2831_p6), %s3387_s11, 1024, %s473_s23, [#allocation21], %s2701_s0, %s2701_s0, %s2702_s15  }
  0xa6   : > { %s3411_s2 = sld [smem:[#allocation36_spill]] }
  0xac   : > { %s2408_s22 = scalar_lea.hbm %s3411_s2, 16 }
  0xad   : > { %p2409_p13 = scmp.ne.s32.totalorder %s3411_s2, %s2408_s22  ;;  %p2415_p3 = scmp.lt.u32.totalorder %s2408_s22, %s3411_s2 }
  0xaf   : > { %p2411_p0 = pnand %p2409_p13, %p2845_p8 }
  0xb1   : > { %p2412_p1 = pneg %p2411_p0 }
  0xb3   : > { %p2417_p2 = pnand %p2415_p3, %p2412_p1 }
  0xb5   : > { %2420 = shalt.err (!%p2417_p2)
}
  0xb6   : > { %s2421_s24 = scalar_lea.vmem %s369_s29, 16  ;;  %s2428_s0 = scalar_lea.vmem %s369_s29, 32 }
  0xb7   : > { %p2422_p5 = scmp.ne.s32.totalorder %s369_s29, %s2421_s24  ;;  %p2429_p10 = scmp.lt.s32.totalorder %s369_s29, %s369_s29 }
  0xb8   : > { %p2430_p11 = scmp.lt.s32.totalorder %s2428_s0, %s2421_s24 }
  0xb9   : > { %p2424_p7 = pnand %p2422_p5, %p2845_p8 }
  0xba   : > { %p2431_p12 = por %p2430_p11, %p2429_p10 }
  0xbb   : > { %p2425_p9 = pneg %p2424_p7 }
  0xbd   : > { %p2432_p4 = pnand %p2431_p12, %p2425_p9 }
  0xbf   : > { %2435 = shalt.err (!%p2432_p4)
}
  0xc0   : > { %2087 = dma.hbm_to_vmem [thread:$0]  (!%p2831_p6), %s3411_s2, 16, %s369_s29, [#allocation6]  }
  0xc1   : > { %s2707_s19 = smov [#allocation10]   ;;  %s2708_s3 = smov [#allocation13]  }
  0xc2   : > { %s392_s13 = sshll.u32 %s2707_s19, 4  ;;  %s416_s14 = sshll.u32 %s2708_s3, 4  ;;  %s393_s13 = int_to_ptr.vmem [resolvable:$true] %s392_s13  ;;  %s417_s14 = int_to_ptr.vmem [resolvable:$true] %s416_s14 }
  0xc3   : > { %s2436_s30 = scalar_lea.hbm %s3380_s4, 16 }
  0xc4   : > { %p2437_p13 = scmp.ne.s32.totalorder %s3380_s4, %s2436_s30  ;;  %p2443_p3 = scmp.lt.u32.totalorder %s2436_s30, %s3380_s4 }
  0xc6   : > { %p2439_p0 = pnand %p2437_p13, %p2845_p8 }
  0xc8   : > { %p2440_p1 = pneg %p2439_p0 }
  0xca   : > { %p2445_p2 = pnand %p2443_p3, %p2440_p1 }
  0xcc   : > { %2448 = shalt.err (!%p2445_p2)
}
  0xcd   : > { %s2449_s29 = scalar_lea.vmem %s393_s13, 16  ;;  %s2456_s0 = scalar_lea.vmem %s393_s13, 32 }
  0xce   : > { %p2450_p5 = scmp.ne.s32.totalorder %s393_s13, %s2449_s29  ;;  %p2457_p10 = scmp.lt.s32.totalorder %s393_s13, %s393_s13 }
  0xcf   : > { %p2458_p11 = scmp.lt.s32.totalorder %s2456_s0, %s2449_s29 }
  0xd0   : > { %p2452_p7 = pnand %p2450_p5, %p2845_p8 }
  0xd1   : > { %p2459_p12 = por %p2458_p11, %p2457_p10 }
  0xd2   : > { %p2453_p9 = pneg %p2452_p7 }
  0xd4   : > { %p2460_p4 = pnand %p2459_p12, %p2453_p9 }
  0xd6   : > { %2463 = shalt.err (!%p2460_p4)
}
  0xd7   : > { %2093 = dma.hbm_to_vmem [thread:$0]  (!%p2831_p6), %s3380_s4, 16, %s393_s13, [#allocation9]  }
  0xd8   : > { %s2464_s21 = scalar_lea.hbm %s3382_s6, 16 }
  0xd9   : > { %p2465_p13 = scmp.ne.s32.totalorder %s3382_s6, %s2464_s21  ;;  %p2471_p3 = scmp.lt.u32.totalorder %s2464_s21, %s3382_s6 }
  0xdb   : > { %p2467_p0 = pnand %p2465_p13, %p2845_p8 }
  0xdd   : > { %p2468_p1 = pneg %p2467_p0 }
  0xdf   : > { %p2473_p2 = pnand %p2471_p3, %p2468_p1 }
  0xe1   : > { %2476 = shalt.err (!%p2473_p2)
}
  0xe2   : > { %s2477_s20 = scalar_lea.vmem %s417_s14, 16  ;;  %s2484_s13 = scalar_lea.vmem %s417_s14, 32 }
  0xe3   : > { %p2478_p5 = scmp.ne.s32.totalorder %s417_s14, %s2477_s20  ;;  %p2485_p10 = scmp.lt.s32.totalorder %s417_s14, %s417_s14 }
  0xe4   : > { %p2486_p11 = scmp.lt.s32.totalorder %s2484_s13, %s2477_s20 }
  0xe5   : > { %p2480_p7 = pnand %p2478_p5, %p2845_p8 }
  0xe6   : > { %p2487_p12 = por %p2486_p11, %p2485_p10 }
  0xe7   : > { %p2481_p9 = pneg %p2480_p7 }
  0xe9   : > { %p2488_p4 = pnand %p2487_p12, %p2481_p9 }
  0xeb   : > { %2491 = shalt.err (!%p2488_p4)
}
  0xec   : > { %2099 = dma.hbm_to_vmem [thread:$0]  (!%p2831_p6), %s3382_s6, 16, %s417_s14, [#allocation12]  }
  0xed   : > { %s2709_s0 = smov [#allocation16]   ;;  %s2710_s23 = smov [#allocation19]  }
  0xee   : > { %s438_s15 = sshll.u32 %s2709_s0, 4  ;;  %s462_s19 = sshll.u32 %s2710_s23, 4  ;;  %s439_s15 = int_to_ptr.vmem [resolvable:$true] %s438_s15  ;;  %s463_s19 = int_to_ptr.vmem [resolvable:$true] %s462_s19 }
  0xef   : > { %s2492_s22 = scalar_lea.hbm %s3384_s8, 16 }
  0xf0   : > { %p2493_p13 = scmp.ne.s32.totalorder %s3384_s8, %s2492_s22  ;;  %p2499_p3 = scmp.lt.u32.totalorder %s2492_s22, %s3384_s8 }
  0xf2   : > { %p2495_p0 = pnand %p2493_p13, %p2845_p8 }
  0xf4   : > { %p2496_p1 = pneg %p2495_p0 }
  0xf6   : > { %p2501_p2 = pnand %p2499_p3, %p2496_p1 }
  0xf8   : > { %2504 = shalt.err (!%p2501_p2)
}
  0xf9   : > { %s2505_s14 = scalar_lea.vmem %s439_s15, 16  ;;  %s2512_s13 = scalar_lea.vmem %s439_s15, 32 }
  0xfa   : > { %p2506_p5 = scmp.ne.s32.totalorder %s439_s15, %s2505_s14  ;;  %p2513_p10 = scmp.lt.s32.totalorder %s439_s15, %s439_s15 }
  0xfb   : > { %p2514_p11 = scmp.lt.s32.totalorder %s2512_s13, %s2505_s14 }
  0xfc   : > { %p2508_p7 = pnand %p2506_p5, %p2845_p8 }
  0xfd   : > { %p2515_p12 = por %p2514_p11, %p2513_p10 }
  0xfe   : > { %p2509_p9 = pneg %p2508_p7 }
 0x100   : > { %p2516_p4 = pnand %p2515_p12, %p2509_p9 }
 0x102   : > { %2519 = shalt.err (!%p2516_p4)
}
 0x103   : > { %2105 = dma.hbm_to_vmem [thread:$0]  (!%p2831_p6), %s3384_s8, 16, %s439_s15, [#allocation15]  }
 0x104   : > { %s2520_s3 = scalar_lea.hbm %s3386_s10, 16 }
 0x105   : > { %p2521_p13 = scmp.ne.s32.totalorder %s3386_s10, %s2520_s3  ;;  %p2527_p3 = scmp.lt.u32.totalorder %s2520_s3, %s3386_s10 }
 0x107   : > { %p2523_p0 = pnand %p2521_p13, %p2845_p8 }
 0x109   : > { %p2524_p1 = pneg %p2523_p0 }
 0x10b   : > { %p2529_p2 = pnand %p2527_p3, %p2524_p1 }
 0x10d   : > { %2532 = shalt.err (!%p2529_p2)
}
 0x10e   : > { %s2533_s1 = scalar_lea.vmem %s463_s19, 16  ;;  %s2540_s15 = scalar_lea.vmem %s463_s19, 32 }
 0x10f   : > { %p2534_p5 = scmp.ne.s32.totalorder %s463_s19, %s2533_s1  ;;  %p2541_p10 = scmp.lt.s32.totalorder %s463_s19, %s463_s19 }
 0x110   : > { %p2542_p11 = scmp.lt.s32.totalorder %s2540_s15, %s2533_s1 }
 0x111   : > { %p2536_p7 = pnand %p2534_p5, %p2845_p8 }
 0x112   : > { %p2543_p12 = por %p2542_p11, %p2541_p10 }
 0x113   : > { %p2537_p9 = pneg %p2536_p7 }
 0x115   : > { %p2544_p4 = pnand %p2543_p12, %p2537_p9 }
 0x117   : > { %2547 = shalt.err (!%p2544_p4)
}
 0x118   : > { %2111 = dma.hbm_to_vmem [thread:$0]  (!%p2831_p6), %s3386_s10, 16, %s463_s19, [#allocation18]  }
 0x119   : > { %s2711_s13 = smov [#allocation22]   ;;  %s2548_s23 = scalar_lea.hbm %s3388_s12, 16 }
 0x11a   : > { %s486_s24 = sshll.u32 %s2711_s13, 4  ;;  %p2549_p13 = scmp.ne.s32.totalorder %s3388_s12, %s2548_s23  ;;  %s487_s24 = int_to_ptr.vmem [resolvable:$true] %s486_s24 }
 0x11b   : > { %p2555_p3 = scmp.lt.u32.totalorder %s2548_s23, %s3388_s12 }
 0x11c   : > { %p2551_p0 = pnand %p2549_p13, %p2845_p8 }
 0x11e   : > { %p2552_p1 = pneg %p2551_p0 }
 0x120   : > { %p2557_p2 = pnand %p2555_p3, %p2552_p1 }
 0x122   : > { %2560 = shalt.err (!%p2557_p2)
}
 0x123   : > { %s2561_s19 = scalar_lea.vmem %s487_s24, 16  ;;  %s2568_s17 = scalar_lea.vmem %s487_s24, 32 }
 0x124   : > { %p2562_p5 = scmp.ne.s32.totalorder %s487_s24, %s2561_s19  ;;  %p2569_p10 = scmp.lt.s32.totalorder %s487_s24, %s487_s24 }
 0x125   : > { %p2570_p11 = scmp.lt.s32.totalorder %s2568_s17, %s2561_s19 }
 0x126   : > { %p2564_p7 = pnand %p2562_p5, %p2845_p8 }
 0x127   : > { %p2571_p12 = por %p2570_p11, %p2569_p10 }
 0x128   : > { %p2565_p9 = pneg %p2564_p7 }
 0x12a   : > { %p2572_p4 = pnand %p2571_p12, %p2565_p9 }
 0x12c   : > { %2575 = shalt.err (!%p2572_p4)
}
 0x12d   : > { %s3412_s16 = sld [smem:[#allocation32_spill]]  ;;  %s1812_s20 = sadd.s32 4294967294, %s2696_s28  }
 0x12e   : > { %2117 = dma.hbm_to_vmem [thread:$0]  (!%p2831_p6), %s3388_s12, 16, %s487_s24, [#allocation21]  }
 0x12f   : > { %s3089_s18 = sadd.s32 1, %s2696_s28   ;;  %s42_s13 = sadd.s32 1, %s2692_s27 }
 0x130   : > { %s39_s14 = ssub.s32 %s2696_s28, %s3089_s18  ;;  %p49_p13 = scmp.ne.s32.totalorder %s2692_s27, %s2688_s26 }
 0x131   : > { %p40_p8 = scmp.eq.s32.totalorder %s39_s14, 0  ;;  %p50_p0 = scmp.eq.s32.totalorder %s2696_s28, 0 }
 0x132   : > { %p55_p1 = scmp.ne.s32.totalorder %s2688_s26, %s2684_s25  ;;  %p337_p7 = scmp.eq.s32.totalorder %s1812_s20, 1 }
 0x133   : > { %s3100_s29 = scalar_select %p40_p8, %s2692_s27, %s42_s13  }
 0x134   : > { %p3102_p3 = por %p50_p0, %p49_p13  ;;  %p3414_p2 = scmp.eq.s32.totalorder %s3412_s16, 0 }
 0x135   : > { %p331_p5 = scmp.eq.s32.totalorder %s3412_s16, 1  ;;  %p2138_p9 = scmp.lt.s32.totalorder %s2696_s28, 2 }
 0x136   : > { %p3108_p6 = por %p3414_p2, %p55_p1  ;;  %s497_s23 = sand.u32 1, %s2692_s27  }
 0x137   : > { %p3115_p10 = por %p331_p5, %p49_p13  ;;  %p3119_p11 = por %p337_p7, %p55_p1 }
 0x138   : > { %s1827_s22 = sshll.u32 %s497_s23, 3  ;;  %s1828_s30 = sshll.u32 %s2696_s28, 7 }
 0x139   : > { %s3416_s3 = scalar_select %p3115_p10, 1, 0 }
 0x13a   : > { %s3417_s21 = scalar_select %p3119_p11, 1, 0 }
 0x13b   : > { %s3418_s1 = sld [smem:[#allocation34_spill]]  ;;  %s501_s16 = scalar_lea.vmem [#allocation2], %s1827_s22 }
 0x13c   : > { %s508_s20 = sshll.u32 %s501_s16, 4  ;;  %p3133_p12 = pnand %p2138_p9, %p3102_p3  ;;  %s3129_s20 = int_to_ptr.vmem [resolvable:$true] %s508_s20 }
 0x13d   : > { %s498_s13 = scalar_lea.sflag [#allocation3], %s497_s23 }
 0x13e   : > { %p2578_p8 = pneg %p3133_p12 }
 0x141   : > { %s3127_s15 = scalar_lea.hbm %s3418_s1, %s1828_s30  ;;  %s2581_s19 = scalar_lea.hbm %s3418_s1, 256 }
 0x142   : > { %s2576_s2 = scalar_lea.hbm %s3127_s15, 128  ;;  %p2582_p1 = scmp.lt.u32.totalorder %s3127_s15, %s3418_s1 }
 0x143   : > { %p2577_p4 = scmp.ne.s32.totalorder %s3127_s15, %s2576_s2  ;;  %p2583_p3 = scmp.lt.u32.totalorder %s2581_s19, %s2576_s2 }
 0x144   : > { %p2585_p5 = scmp.lt.u32.totalorder %s2576_s2, %s3127_s15 }
 0x145   : > { %p2579_p13 = pnand %p2578_p8, %p2577_p4  ;;  %p2584_p2 = por %p2583_p3, %p2582_p1 }
 0x147   : > { %p2580_p0 = pneg %p2579_p13  ;;  %p2586_p7 = por %p2585_p5, %p2584_p2 }
 0x149   : > { %p2587_p9 = pnand %p2586_p7, %p2580_p0 }
 0x14b   : > { %2590 = shalt.err (!%p2587_p9)
}
 0x14c   : > { %s2591_s23 = scalar_lea.vmem %s3129_s20, 128  ;;  %s2712_s16 = smov [#allocation2]  }
 0x14d   : > { %p2592_p4 = scmp.ne.s32.totalorder %s3129_s20, %s2591_s23  ;;  %s2596_s22 = sshll.u32 %s2712_s16, 4  ;;  %s2597_s22 = int_to_ptr.vmem [resolvable:$false] %s2596_s22 }
 0x14e   : > { %s2598_s30 = scalar_lea.vmem %s2597_s22, 256  ;;  %p2599_p10 = scmp.lt.s32.totalorder %s3129_s20, %s2597_s22 }
 0x14f   : > { %p2594_p13 = pnand %p2592_p4, %p2578_p8  ;;  %p2600_p1 = scmp.lt.s32.totalorder %s2598_s30, %s2591_s23 }
 0x151   : > { %p2595_p11 = pneg %p2594_p13  ;;  %p2601_p3 = por %p2600_p1, %p2599_p10 }
 0x153   : > { %p2602_p2 = pnand %p2601_p3, %p2595_p11 }
 0x155   : > { %2605 = shalt.err (!%p2602_p2)
}
 0x156   : > { %2121 = dma.hbm_to_vmem [thread:$0]  (!%p3133_p12), %s3127_s15, 128, %s3129_s20, %s498_s13  }
 0x157   : > { %s3420_s2 = sld [smem:[#allocation33_spill]] }
 0x15d   : > { %p3421_p0 = scmp.ne.s32.totalorder %s3420_s2, 0 }
 0x15e   : > { %s3165_s19 = sand.u32 (!%p3421_p0), 1, %s2688_s26  }
 0x15f   : > { %517 = sbr.rel (%p3421_p0) target bundleno = 2915 (0xb63), region = 72  ;;  %s1830_s0 = sshll.u32 (!%p3421_p0), %s3165_s19, 3 }
 0x160   : > { %s520_s17 = scalar_lea.sflag (!%p3421_p0), [#allocation3], %s3165_s19  ;;  %s523_s23 = scalar_lea.vmem (!%p3421_p0), [#allocation2], %s1830_s0 }
 0x166   : > { %2651 = dma.done.wait (%p3108_p6), %s520_s17, 128  }
 0x167   : > { %2653 = vsyncadd (%p3108_p6), %s520_s17, 4294967168  ;;  %s3422_s15 = sld [smem:[#allocation32_spill]] }
 0x16d   : > { %p3423_p10 = scmp.eq.s32.totalorder %s3422_s15, 0 }
 0x16f   : > { %2655 = dma.done.wait (%p3423_p10), [#allocation6], 32   ;;  %p3424_p11 = pmov %p3423_p10 }
 0x170   : > { %p3425_p12 = pmov %p3423_p10 }
 0x171   : > { %2657 = vsyncadd (%p3424_p11), [#allocation6], 4294967264 }
 0x172   : > { %2659 = dma.done.wait (%p3425_p12), [#allocation9], 272   ;;  %p3426_p8 = pmov %p3423_p10 }
 0x174   : > { %2661 = vsyncadd (%p3426_p8), [#allocation9], 4294967024  ;;  %p3427_p5 = pmov %p3426_p8 }
 0x176   : > { %2663 = dma.done.wait (%p3427_p5), [#allocation12], 272   ;;  %p3428_p7 = pmov %p3427_p5 }
 0x177   : > { %p3429_p6 = pmov %p3427_p5 }
 0x178   : > { %2665 = vsyncadd (%p3428_p7), [#allocation12], 4294967024 }
 0x179   : > { %2667 = dma.done.wait (%p3429_p6), [#allocation15], 32   ;;  %p3430_p9 = pmov %p3427_p5 }
 0x17a   : > { %p3431_p4 = pmov %p3427_p5 }
 0x17b   : > { %2669 = vsyncadd (%p3430_p9), [#allocation15], 4294967264 }
 0x17c   : > { %2671 = dma.done.wait (%p3431_p4), [#allocation18], 272   ;;  %p3432_p13 = pmov %p3431_p4 }
 0x17d   : > { %p3433_p1 = pmov %p3431_p4 }
 0x17e   : > { %2673 = vsyncadd (%p3432_p13), [#allocation18], 4294967024 }
 0x17f   : > { %2675 = dma.done.wait (%p3433_p1), [#allocation21], 1040   ;;  %p3434_p3 = pmov %p3433_p1 }
 0x180   : > { %vm618_vm0 = vcmask 261120   ;;  %v3199_v0 = vld [vmem:[%s523_s23] sm:$0xff]  ;;  %v2206_v7 = vld [vmem:[#allocation8] sm:$0xff]   ;;  %v2713_v8 = vmov 0.0   ;;  %vm2714_vm1 = vmmov 0   ;;  %s2715_s24 = smov 104   ;;  %v743_v49 = vlaneseq }
 0x181   : > { %2677 = vsyncadd (%p3434_p3), [#allocation21], 4294966256  ;;  %v619_v1 = vsel %vm618_vm0, %v3199_v0, 0.0  ;;  %1921 = vmatprep.subr.bf16.mxu1 %v2713_v8  ;;  %1925 = vmatprep.mubr.msk.bf16.mxu1 %vm2714_vm1, %v2713_v8  ;;  %v2207_v9 = vld [vmem:[#allocation8 + $0x8] sm:$0xff]   ;;  %v1844_v14 = vld [vmem:[#allocation5] ss:$0 sm:$0xff] }
 0x182   : > { %620 = vadd.xlane.f32.xlu0 %v619_v1  ;;  %1922 = vmatpush3.bf16.msra.mxu1 %v2206_v7  ;;  %v1845_v16 = vld [vmem:[#allocation7] ss:$0 sm:$0xff]  ;;  %v1846_v20 = vld [vmem:[#allocation10] ss:$0 sm:$0xff]  ;;  %s2716_s20 = smov 120   ;;  %s2717_s14 = smov 112  }
 0x183   : > { %1947 = vmatprep.subr.bf16.mxu0 %v2713_v8  ;;  %1923 = vmatprep.subr.bf16.mxu1 %v2713_v8  ;;  %s2718_s13 = smov 96   ;;  %vm752_vm2 = vcmask 64512   ;;  %v744_v50 = vshrl.u32 %v743_v49, 7  ;;  %v746_v51 = vand.u32 127, %v743_v49  ;;  %v2719_v52 = vmov -1e+30  }
 0x184   : > { %1949 = vmatprep.mubr.msk.bf16.mxu0 %vm2714_vm1, %v2713_v8  ;;  %s2720_s16 = smov 64   ;;  %vm999_vm4 = vcmask 1043456   ;;  %s1879_s22 = sshll.u32 %s3422_s15, 7 }
 0x185   : > { %vm747_vm3 = vcmp.ge.s32.totalorder %v744_v50, %v746_v51  ;;  %s613_s30 = scalar_lea.vmem [#allocation23], %s1830_s0  ;;  %s1615_s0 = scalar_lea.sflag [#allocation4], %s3165_s19 }
 0x186   : > { %1924 = vmatpush3.bf16.msra.mxu1 %v2207_v9  ;;  %v748_v53 = vsel %vm747_vm3, 0.0, %v2719_v52  ;;  %s1628_s2 = sshll.u32 %s613_s30, 4  ;;  %p3436_p0 = scmp.ne.s32.totalorder %s3416_s3, 0  ;;  %s3333_s2 = int_to_ptr.vmem [resolvable:$true] %s1628_s2 }
 0x187   : > { %1929 = vmatprep.subr.bf16.mxu1 %v2713_v8  ;;  %s2606_s15 = scalar_lea.vmem %s3333_s2, 128 }
 0x188   : > { %p2607_p2 = scmp.ne.s32.totalorder %s3333_s2, %s2606_s15 }
 0x18a   : > { %p2608_p10 = pnand %p2607_p2, %p3436_p0 }
 0x18c   : > { %p2609_p11 = pneg %p2608_p10 }
 0x20f   : > { %v621_v2 = vpop.xlane.xlu0 %620 }
 0x210   : > { %v623_v3 = vmul.f32 0.03125, %v621_v2 }
 0x212   : > { %v624_v4 = vsub.f32 %v3199_v0, %v623_v3 }
 0x214   : > { %v625_v5 = vmul.f32 %v624_v4, %v624_v4 }
 0x216   : > { %v626_v6 = vsel %vm618_vm0, %v625_v5, 0.0 }
 0x217   : > { %627 = vadd.xlane.f32.xlu0 %v626_v6 }
 0x2a4   : > { %v628_v10 = vpop.xlane.xlu0 %627 }
 0x2a5   : > { %v629_v11 = vmul.f32 0.03125, %v628_v10 }
 0x2a7   : > { %v630_v12 = vadd.f32 1e-05, %v629_v11 }
 0x2a9   : > { %2218 = vrsqrt.f32 %v630_v12 }
 0x2b3   : > { %v2219_v13 = vpop.eup %2218 }
 0x2b4   : > { %v632_v15 = vmul.f32 %v2219_v13, %v624_v4 }
 0x2b6   : > { %v639_v17 = vmul.f32 %v1844_v14, %v632_v15 }
 0x2b8   : > { %v646_v18 = vadd.f32 %v1845_v16, %v639_v17 }
 0x2ba   : > { %v647_v19 = vpack.c.bf16 %v646_v18, %v646_v18 }
 0x2bc   : > { %1926 = vmatmul.mubr.msk.bf16.vlgmr.msra.gmra.mrb[0].mxu1 %vm618_vm0, %v647_v19 }
 0x2bd   : > { %1931 = vmatprep.mubr.msk.bf16.mxu1 %vm2714_vm1, %v2713_v8 }
 0x38f   : > { %v708_v21 = vpop.f32.mrb[0].mxu1 }
 0x390   : > { %v709_v22 = vadd.f32 %v1846_v20, %v708_v21  ;;  %v1927_v23 = vpop.f32.mrb[1].mxu1 }
 0x391   : > { %v711_v24 = vpop.f32.mrb[2].mxu1 }
 0x392   : > { %736 = vrot.lane.b32.xlu0 %v709_v22, %s2715_s24  ;;  %730 = vrot.lane.b32.xlu1 %v709_v22, %s2716_s20  ;;  %v1928_v25 = vpop.f32.mrb[3].mxu1  ;;  %v714_v26 = vmul.f32 0.35355338, %v709_v22  ;;  %v3216_v27 = vpack.c.bf16 %v709_v22, %v709_v22 }
 0x394   : > { %v725_v36 = vpack.c.bf16 %v714_v26, %v714_v26 }
 0x396   : > { %733 = vrot.lane.b32.xlu1 %v709_v22, %s2717_s14  ;;  %722 = vrot.lane.b32.xlu0 %v714_v26, %s2715_s24  ;;  %s3435_s24 = sld [smem:[#allocation38_spill]] }
 0x39a   : > { %750 = vrot.lane.b32.xlu1 %v3216_v27, %s2718_s13 }
 0x404   : > { %v731_v28 = vpop.permute.xlu1 %730  ;;  %v737_v34 = vpop.permute.xlu0 %736 }
 0x405   : > { %v3219_v29 = vpack.c.bf16 %v731_v28, %v731_v28  ;;  %v3227_v35 = vpack.c.bf16 %v737_v34, %v737_v34 }
 0x407   : > { %800 = vrot.lane.b32.xlu1 %v3219_v29, %s2718_s13 }
 0x408   : > { %v734_v30 = vpop.permute.xlu1 %733  ;;  %v723_v45 = vpop.permute.xlu0 %722 }
 0x409   : > { %v3222_v32 = vpack.c.bf16 %v734_v30, %v734_v30  ;;  %v728_v48 = vpack.c.bf16 %v723_v45, %v723_v45 }
 0x40b   : > { %716 = vrot.lane.b32.xlu1 %v714_v26, %s2716_s20  ;;  %s3331_s20 = scalar_lea.hbm %s3435_s24, %s1879_s22 }
 0x40c   : > { %v751_v31 = vpop.permute.xlu1 %750 }
 0x40d   : > { %v757_v33 = vsel %vm752_vm2, %v751_v31, 0 }
 0x40e   : > { %1930 = vmatpush3.bf16.xpose.msra.mxu1 %v757_v33 }
 0x40f   : > { %849 = vrot.lane.b32.xlu1 %v3222_v32, %s2718_s13  ;;  %1935 = vmatprep.subr.bf16.mxu1 %v2713_v8 }
 0x413   : > { %898 = vrot.lane.b32.xlu1 %v3227_v35, %s2718_s13 }
 0x415   : > { %1932 = vmatmul.mubr.msk.bf16.vlgmr.msra.gmra.mrb[4].mxu1 %vm752_vm2, %v725_v36 }
 0x416   : > { %1937 = vmatprep.mubr.msk.bf16.mxu1 %vm2714_vm1, %v2713_v8 }
 0x417   : > { %719 = vrot.lane.b32.xlu1 %v714_v26, %s2717_s14  ;;  %s2721_s14 = smov [#allocation23]  }
 0x418   : > { %s2610_s13 = sshll.u32 %s2721_s14, 4  ;;  %s2611_s13 = int_to_ptr.vmem [resolvable:$false] %s2610_s13 }
 0x419   : > { %p2613_p12 = scmp.lt.s32.totalorder %s3333_s2, %s2611_s13 }
 0x479   : > { %v801_v37 = vpop.permute.xlu1 %800 }
 0x47a   : > { %v806_v38 = vsel %vm752_vm2, %v801_v37, 0 }
 0x47b   : > { %1936 = vmatpush3.bf16.xpose.msra.mxu1 %v806_v38 }
 0x47c   : > { %1941 = vmatprep.subr.bf16.mxu1 %v2713_v8 }
 0x47d   : > { %v717_v39 = vpop.permute.xlu1 %716 }
 0x47e   : > { %v726_v40 = vpack.c.bf16 %v717_v39, %v717_v39 }
 0x481   : > { %v850_v41 = vpop.permute.xlu1 %849 }
 0x482   : > { %v855_v42 = vsel %vm752_vm2, %v850_v41, 0  ;;  %1938 = vmatmul.mubr.msk.bf16.vlgmr.msra.gmra.mrb[8].mxu1 %vm752_vm2, %v726_v40 }
 0x483   : > { %1942 = vmatpush3.bf16.xpose.msra.mxu1 %v855_v42  ;;  %1943 = vmatprep.mubr.msk.bf16.mxu1 %vm2714_vm1, %v2713_v8 }
 0x484   : > { %1953 = vmatprep.subr.bf16.mxu1 %v2713_v8 }
 0x485   : > { %v899_v43 = vpop.permute.xlu1 %898 }
 0x486   : > { %v904_v44 = vsel %vm752_vm2, %v899_v43, 0 }
 0x487   : > { %1948 = vmatpush3.bf16.xpose.msra.mxu0 %v904_v44 }
 0x488   : > { %1959 = vmatprep.subr.bf16.mxu0 %v2713_v8 }
 0x489   : > { %v720_v46 = vpop.permute.xlu1 %719 }
 0x48a   : > { %v727_v47 = vpack.c.bf16 %v720_v46, %v720_v46 }
 0x48c   : > { %1944 = vmatmul.mubr.msk.bf16.vlgmr.msra.gmra.mrb[12].mxu1 %vm752_vm2, %v727_v47 }
 0x48d   : > { %1955 = vmatprep.mubr.msk.bf16.mxu1 %vm2714_vm1, %v2713_v8 }
 0x48e   : > { %1950 = vmatmul.mubr.msk.bf16.vlgmr.msra.gmra.mrb[0].mxu0 %vm752_vm2, %v728_v48 }
 0x48f   : > { %1961 = vmatprep.mubr.msk.bf16.mxu0 %vm2714_vm1, %v2713_v8 }
 0x4e8   : > { %v793_v54 = vpop.f32.mrb[4].mxu1 }
 0x4e9   : > { %v794_v55 = vadd.f32 %v793_v54, %v748_v53  ;;  %v1933_v56 = vpop.f32.mrb[5].mxu1 }
 0x4ea   : > { %v796_v57 = vpop.f32.mrb[6].mxu1 }
 0x4eb   : > { %v1934_v58 = vpop.f32.mrb[7].mxu1  ;;  %v946_v59 = vsel %vm752_vm2, %v794_v55, -inf }
 0x4ec   : > { %947 = vmax.xlane.f32.xlu1 %v946_v59  ;;  %v1192_v58 = vld [vmem:[#allocation11 + $0x4] sm:$0xf] }
 0x555   : > { %v842_v60 = vpop.f32.mrb[8].mxu1 }
 0x556   : > { %v843_v61 = vadd.f32 %v842_v60, %v748_v53  ;;  %v1939_v62 = vpop.f32.mrb[9].mxu1 }
 0x557   : > { %v845_v63 = vpop.f32.mrb[10].mxu1 }
 0x558   : > { %v1940_v1 = vpop.f32.mrb[11].mxu1  ;;  %v949_v2 = vsel %vm752_vm2, %v843_v61, -inf  ;;  %v1245_v63 = vsel %vm999_vm4, %v1192_v58, 0  ;;  %v2208_v58 = vld [vmem:[#allocation17] sm:$0xff]  }
 0x559   : > { %950 = vmax.xlane.f32.xlu0 %v949_v2  ;;  %v1193_v1 = vld [vmem:[#allocation11 + $0x8] sm:$0xf] }
 0x55f   : > { %v891_v3 = vpop.f32.mrb[12].mxu1 }
 0x560   : > { %v892_v4 = vadd.f32 %v891_v3, %v748_v53  ;;  %v1945_v5 = vpop.f32.mrb[13].mxu1 }
 0x561   : > { %v894_v6 = vpop.f32.mrb[14].mxu1  ;;  %v940_v7 = vpop.f32.mrb[0].mxu0  ;;  %v1291_v5 = vsel %vm999_vm4, %v1193_v1, 0  ;;  %v1863_v1 = vld [vmem:[#allocation14] ss:$0 sm:$0xff] }
 0x562   : > { %v941_v9 = vadd.f32 %v940_v7, %v748_v53  ;;  %v1946_v10 = vpop.f32.mrb[15].mxu1  ;;  %v1951_v11 = vpop.f32.mrb[1].mxu0  ;;  %v952_v12 = vsel %vm752_vm2, %v892_v4, -inf }
 0x563   : > { %v943_v13 = vpop.f32.mrb[2].mxu0  ;;  %953 = vmax.xlane.f32.xlu0 %v952_v12 }
 0x564   : > { %v1952_v14 = vpop.f32.mrb[3].mxu0  ;;  %v955_v15 = vsel %vm752_vm2, %v941_v9, -inf }
 0x565   : > { %956 = vmax.xlane.f32.xlu1 %v955_v15 }
 0x576   : > { %1043 = vrot.lane.b32.xlu1 %v3219_v29, %s2720_s16 }
 0x579   : > { %994 = vrot.lane.b32.xlu0 %v3216_v27, %s2720_s16  ;;  %v948_v16 = vpop.xlane.xlu1 %947 }
 0x57a   : > { %v958_v17 = vsub.f32 %v794_v55, %v948_v16  ;;  %v1191_v55 = vld [vmem:[#allocation11] sm:$0xf] }
 0x57c   : > { %v962_v18 = vmul.f32 1.442695, %v958_v17 }
 0x57e   : > { %2220 = vpow2.f32 %v962_v18 }
 0x588   : > { %v2221_v19 = vpop.eup %2220 }
 0x589   : > { %v970_v20 = vsel %vm752_vm2, %v2221_v19, 0.0 }
 0x598   : > { %971 = vadd.xlane.f32.xlu0 %v970_v20 }
 0x5e6   : > { %v951_v21 = vpop.xlane.xlu0 %950 }
 0x5e7   : > { %v959_v22 = vsub.f32 %v843_v61, %v951_v21  ;;  %v1199_v61 = vsel %vm999_vm4, %v1191_v55, 0 }
 0x5e9   : > { %v964_v23 = vmul.f32 1.442695, %v959_v22 }
 0x5eb   : > { %2222 = vpow2.f32 %v964_v23 }
 0x5f0   : > { %v954_v24 = vpop.xlane.xlu0 %953 }
 0x5f1   : > { %v960_v25 = vsub.f32 %v892_v4, %v954_v24 }
 0x5f2   : > { %v957_v26 = vpop.xlane.xlu1 %956 }
 0x5f3   : > { %v966_v28 = vmul.f32 1.442695, %v960_v25  ;;  %v961_v29 = vsub.f32 %v941_v9, %v957_v26  ;;  %v1194_v9 = vld [vmem:[#allocation11 + $0xc] sm:$0xf] }
 0x5f4   : > { %v995_v30 = vpop.permute.xlu0 %994  ;;  %v1337_v13 = vsel %vm999_vm4, %v1194_v9, 0  ;;  %v2212_v9 = vld [vmem:[#allocation20 + $0x10] sm:$0xff]  }
 0x5f5   : > { %v2223_v27 = vpop.eup %2222  ;;  %2224 = vpow2.f32 %v966_v28  ;;  %v968_v31 = vmul.f32 1.442695, %v961_v29  ;;  %v1001_v33 = vsel %vm999_vm4, %v995_v30, 0 }
 0x5f6   : > { %v1044_v34 = vpop.permute.xlu1 %1043  ;;  %1954 = vmatpush3.bf16.msra.mxu1 %v1001_v33  ;;  %v973_v36 = vsel %vm752_vm2, %v2223_v27, 0.0 }
 0x5f7   : > { %2226 = vpow2.f32 %v968_v31  ;;  %v1049_v37 = vsel %vm999_vm4, %v1044_v34, 0  ;;  %974 = vadd.xlane.f32.xlu1 %v973_v36  ;;  %1965 = vmatprep.subr.bf16.mxu1 %v2713_v8 }
 0x5f8   : > { %1960 = vmatpush3.bf16.msra.mxu0 %v1049_v37 }
 0x5f9   : > { %1971 = vmatprep.subr.bf16.mxu0 %v2713_v8 }
 0x5ff   : > { %v2225_v38 = vpop.eup %2224 }
 0x600   : > { %v976_v39 = vsel %vm752_vm2, %v2225_v38, 0.0 }
 0x601   : > { %v2227_v40 = vpop.eup %2226  ;;  %977 = vadd.xlane.f32.xlu0 %v976_v39 }
 0x602   : > { %v979_v41 = vsel %vm752_vm2, %v2227_v40, 0.0 }
 0x603   : > { %980 = vadd.xlane.f32.xlu1 %v979_v41 }
 0x614   : > { %1091 = vrot.lane.b32.xlu1 %v3222_v32, %s2720_s16 }
 0x617   : > { %1139 = vrot.lane.b32.xlu0 %v3227_v35, %s2720_s16  ;;  %s2612_s16 = scalar_lea.vmem %s2611_s13, 256 }
 0x618   : > { %p2614_p8 = scmp.lt.s32.totalorder %s2612_s16, %s2606_s15 }
 0x61a   : > { %p2615_p5 = por %p2614_p8, %p2613_p12 }
 0x61c   : > { %p2616_p7 = pnand %p2615_p5, %p2609_p11 }
 0x625   : > { %v972_v42 = vpop.xlane.xlu0 %971 }
 0x626   : > { %2228 = vrcp.f32 %v972_v42 }
 0x630   : > { %v2229_v43 = vpop.eup %2228 }
 0x631   : > { %v986_v44 = vmul.f32 %v2229_v43, %v2221_v19 }
 0x633   : > { %v990_v45 = vpack.c.bf16 %v986_v44, %v986_v44 }
 0x635   : > { %1956 = vmatmul.mubr.msk.bf16.vlgmr.msra.gmra.mrb[16].mxu1 %vm752_vm2, %v990_v45 }
 0x636   : > { %1967 = vmatprep.mubr.msk.bf16.mxu1 %vm2714_vm1, %v2713_v8 }
 0x684   : > { %v975_v46 = vpop.xlane.xlu1 %974 }
 0x685   : > { %2230 = vrcp.f32 %v975_v46  ;;  %v1862_v46 = vld [vmem:[#allocation13] ss:$0 sm:$0xff] }
 0x68e   : > { %v978_v47 = vpop.xlane.xlu0 %977 }
 0x68f   : > { %v2231_v48 = vpop.eup %2230  ;;  %2232 = vrcp.f32 %v978_v47 }
 0x690   : > { %v987_v49 = vmul.f32 %v2231_v48, %v2223_v27  ;;  %v981_v32 = vpop.xlane.xlu1 %980 }
 0x691   : > { %2234 = vrcp.f32 %v981_v32 }
 0x692   : > { %v1140_v50 = vpop.permute.xlu0 %1139  ;;  %v991_v35 = vpack.c.bf16 %v987_v49, %v987_v49 }
 0x693   : > { %v1145_v51 = vsel %vm999_vm4, %v1140_v50, 0 }
 0x694   : > { %1962 = vmatmul.mubr.msk.bf16.vlgmr.msra.gmra.mrb[4].mxu0 %vm752_vm2, %v991_v35  ;;  %v1092_v52 = vpop.permute.xlu1 %1091 }
 0x695   : > { %v1097_v53 = vsel %vm999_vm4, %v1092_v52, 0  ;;  %1972 = vmatpush3.bf16.msra.mxu0 %v1145_v51  ;;  %1973 = vmatprep.mubr.msk.bf16.mxu0 %vm2714_vm1, %v2713_v8 }
 0x696   : > { %1966 = vmatpush3.bf16.msra.mxu1 %v1097_v53  ;;  %1983 = vmatprep.subr.bf16.mxu0 %v2713_v8 }
 0x697   : > { %1977 = vmatprep.subr.bf16.mxu1 %v2713_v8 }
 0x699   : > { %v2233_v54 = vpop.eup %2232 }
 0x69a   : > { %v988_v56 = vmul.f32 %v2233_v54, %v2225_v38 }
 0x69b   : > { %v2235_v57 = vpop.eup %2234 }
 0x69c   : > { %v989_v59 = vmul.f32 %v2235_v57, %v2227_v40  ;;  %v992_v60 = vpack.c.bf16 %v988_v56, %v988_v56 }
 0x69e   : > { %1968 = vmatmul.mubr.msk.bf16.vlgmr.msra.gmra.mrb[20].mxu1 %vm752_vm2, %v992_v60  ;;  %v993_v62 = vpack.c.bf16 %v989_v59, %v989_v59  ;;  %v2209_v59 = vld [vmem:[#allocation17 + $0x8] sm:$0xff]  }
 0x69f   : > { %1978 = vmatpush3.bf16.msra.mxu1 %v1199_v61  ;;  %1979 = vmatprep.mubr.msk.bf16.mxu1 %vm2714_vm1, %v2713_v8 }
 0x6a0   : > { %1974 = vmatmul.mubr.msk.bf16.vlgmr.msra.gmra.mrb[8].mxu0 %vm752_vm2, %v993_v62  ;;  %1989 = vmatprep.subr.bf16.mxu1 %v2713_v8 }
 0x6a1   : > { %1984 = vmatpush3.bf16.msra.mxu0 %v1245_v63  ;;  %1985 = vmatprep.mubr.msk.bf16.mxu0 %vm2714_vm1, %v2713_v8 }
 0x6a2   : > { %1995 = vmatprep.subr.bf16.mxu0 %v2713_v8 }
 0x708   : > { %v1037_v2 = vpop.f32.mrb[16].mxu1 }
 0x709   : > { %v1187_v3 = vpack.c.bf16 %v1037_v2, %v1037_v2  ;;  %v1957_v4 = vpop.f32.mrb[17].mxu1 }
 0x70a   : > { %v1040_v6 = vpop.f32.mrb[18].mxu1 }
 0x70b   : > { %v1958_v7 = vpop.f32.mrb[19].mxu1  ;;  %1980 = vmatmul.mubr.msk.bf16.vlgmr.msra.gmra.mrb[24].mxu1 %vm752_vm2, %v1187_v3  ;;  %v1864_v3 = vld [vmem:[#allocation16] ss:$0 sm:$0xff] }
 0x70c   : > { %1990 = vmatpush3.bf16.msra.mxu1 %v1291_v5  ;;  %1991 = vmatprep.mubr.msk.bf16.mxu1 %vm2714_vm1, %v2713_v8  ;;  %v2211_v7 = vld [vmem:[#allocation20 + $0x8] sm:$0xff]  }
 0x70d   : > { %2001 = vmatprep.subr.bf16.mxu1 %v2713_v8 }
 0x767   : > { %v1085_v10 = vpop.f32.mrb[4].mxu0 }
 0x768   : > { %v1188_v11 = vpack.c.bf16 %v1085_v10, %v1085_v10  ;;  %v1963_v12 = vpop.f32.mrb[5].mxu0  ;;  %v2213_v10 = vld [vmem:[#allocation20 + $0x18] sm:$0xff]  }
 0x769   : > { %v1088_v14 = vpop.f32.mrb[6].mxu0  ;;  %v2215_v12 = vld [vmem:[#allocation20 + $0x28] sm:$0xff]  }
 0x76a   : > { %v1964_v15 = vpop.f32.mrb[7].mxu0  ;;  %1986 = vmatmul.mubr.msk.bf16.vlgmr.msra.gmra.mrb[12].mxu0 %vm752_vm2, %v1188_v11  ;;  %v2214_v11 = vld [vmem:[#allocation20 + $0x20] sm:$0xff]   ;;  %v2217_v14 = vld [vmem:[#allocation20 + $0x38] sm:$0xff]  }
 0x76b   : > { %1996 = vmatpush3.bf16.msra.mxu0 %v1337_v13  ;;  %1997 = vmatprep.mubr.msk.bf16.mxu0 %vm2714_vm1, %v2713_v8  ;;  %v2216_v13 = vld [vmem:[#allocation20 + $0x30] sm:$0xff]   ;;  %v1865_v15 = vld [vmem:[#allocation19] ss:$0 sm:$0xff] }
 0x76c   : > { %2009 = vmatprep.subr.bf16.mxu0 %v2713_v8 }
 0x771   : > { %v1133_v16 = vpop.f32.mrb[20].mxu1 }
 0x772   : > { %v1189_v17 = vpack.c.bf16 %v1133_v16, %v1133_v16  ;;  %v1969_v18 = vpop.f32.mrb[21].mxu1 }
 0x773   : > { %v1136_v19 = vpop.f32.mrb[22].mxu1  ;;  %v1181_v20 = vpop.f32.mrb[8].mxu0 }
 0x774   : > { %v1190_v21 = vpack.c.bf16 %v1181_v20, %v1181_v20  ;;  %v1970_v22 = vpop.f32.mrb[23].mxu1  ;;  %v1975_v23 = vpop.f32.mrb[9].mxu0  ;;  %1992 = vmatmul.mubr.msk.bf16.vlgmr.msra.gmra.mrb[28].mxu1 %vm752_vm2, %v1189_v17 }
 0x775   : > { %v1184_v24 = vpop.f32.mrb[10].mxu0  ;;  %2005 = vmatprep.mubr.msk.bf16.mxu1 %vm2714_vm1, %v2713_v8  ;;  %2002 = vmatpush3.bf16.msra.mxu1 %v2208_v58 }
 0x776   : > { %v1976_v25 = vpop.f32.mrb[11].mxu0  ;;  %1998 = vmatmul.mubr.msk.bf16.vlgmr.msra.gmra.mrb[16].mxu0 %vm752_vm2, %v1190_v21  ;;  %2003 = vmatprep.subr.bf16.mxu1 %v2713_v8 }
 0x777   : > { %2025 = vmatprep.mubr.msk.bf16.mxu0 %vm2714_vm1, %v2713_v8 }
 0x779   : > { %2004 = vmatpush3.bf16.msra.mxu1 %v2209_v59 }
 0x7de   : > { %v1235_v26 = vpop.f32.mrb[24].mxu1 }
 0x7df   : > { %v1981_v28 = vpop.f32.mrb[25].mxu1  ;;  %v1379_v31 = vsel %vm618_vm0, %v1235_v26, 0.0 }
 0x7e0   : > { %v1238_v29 = vpop.f32.mrb[26].mxu1 }
 0x7e1   : > { %v1982_v30 = vpop.f32.mrb[27].mxu1 }
 0x83d   : > { %v1281_v27 = vpop.f32.mrb[12].mxu0 }
 0x83e   : > { %v1380_v33 = vsel %vm618_vm0, %v1281_v27, 0.0  ;;  %v1987_v34 = vpop.f32.mrb[13].mxu0  ;;  %v1869_v27 = vld [vmem:[#allocation22] ss:$0 sm:$0xff] }
 0x83f   : > { %v1381_v36 = vadd.f32 %v1380_v33, %v1379_v31  ;;  %v1284_v37 = vpop.f32.mrb[14].mxu0 }
 0x840   : > { %v1988_v38 = vpop.f32.mrb[15].mxu0 }
 0x847   : > { %v1327_v39 = vpop.f32.mrb[28].mxu1 }
 0x848   : > { %v1382_v40 = vsel %vm618_vm0, %v1327_v39, 0.0  ;;  %v1993_v41 = vpop.f32.mrb[29].mxu1 }
 0x849   : > { %v1383_v42 = vadd.f32 %v1382_v40, %v1381_v36  ;;  %v1330_v43 = vpop.f32.mrb[30].mxu1  ;;  %v1373_v44 = vpop.f32.mrb[16].mxu0 }
 0x84a   : > { %v1384_v45 = vsel %vm618_vm0, %v1373_v44, 0.0  ;;  %v1994_v47 = vpop.f32.mrb[31].mxu1  ;;  %v1999_v48 = vpop.f32.mrb[17].mxu0 }
 0x84b   : > { %v1385_v49 = vadd.f32 %v1384_v45, %v1383_v42  ;;  %v1376_v32 = vpop.f32.mrb[18].mxu0 }
 0x84c   : > { %v2000_v50 = vpop.f32.mrb[19].mxu0 }
 0x84d   : > { %v1393_v35 = vadd.f32 %v1862_v46, %v1385_v49 }
 0x84f   : > { %v3309_v51 = vadd.f32 %v1393_v35, %v3199_v0  ;;  %v2210_v0 = vld [vmem:[#allocation20] sm:$0xff]  }
 0x850   : > { %2010 = vmatpush3.bf16.msra.mxu0 %v2210_v0 }
 0x851   : > { %v1397_v52 = vsel %vm618_vm0, %v3309_v51, 0.0  ;;  %2011 = vmatprep.subr.bf16.mxu0 %v2713_v8 }
 0x852   : > { %1398 = vadd.xlane.f32.xlu1 %v1397_v52 }
 0x854   : > { %2012 = vmatpush3.bf16.msra.mxu0 %v2211_v7 }
 0x855   : > { %2013 = vmatprep.subr.bf16.mxu0 %v2713_v8 }
 0x858   : > { %2014 = vmatpush3.bf16.msra.mxu0 %v2212_v9 }
 0x859   : > { %2015 = vmatprep.subr.bf16.mxu0 %v2713_v8 }
 0x85c   : > { %2016 = vmatpush3.bf16.msra.mxu0 %v2213_v10 }
 0x85d   : > { %2017 = vmatprep.subr.bf16.mxu0 %v2713_v8 }
 0x860   : > { %2018 = vmatpush3.bf16.msra.mxu0 %v2214_v11 }
 0x861   : > { %2019 = vmatprep.subr.bf16.mxu0 %v2713_v8 }
 0x864   : > { %2020 = vmatpush3.bf16.msra.mxu0 %v2215_v12 }
 0x865   : > { %2021 = vmatprep.subr.bf16.mxu0 %v2713_v8 }
 0x868   : > { %2022 = vmatpush3.bf16.msra.mxu0 %v2216_v13 }
 0x869   : > { %2023 = vmatprep.subr.bf16.mxu0 %v2713_v8 }
 0x86c   : > { %2024 = vmatpush3.bf16.msra.mxu0 %v2217_v14 }
 0x8df   : > { %v1399_v53 = vpop.xlane.xlu1 %1398 }
 0x8e0   : > { %v1400_v54 = vmul.f32 0.03125, %v1399_v53 }
 0x8e2   : > { %v1401_v55 = vsub.f32 %v3309_v51, %v1400_v54 }
 0x8e4   : > { %v1402_v56 = vmul.f32 %v1401_v55, %v1401_v55 }
 0x8e6   : > { %v1403_v57 = vsel %vm618_vm0, %v1402_v56, 0.0 }
 0x8e7   : > { %1404 = vadd.xlane.f32.xlu0 %v1403_v57 }
 0x974   : > { %v1405_v60 = vpop.xlane.xlu0 %1404 }
 0x975   : > { %v1406_v61 = vmul.f32 0.03125, %v1405_v60 }
 0x977   : > { %v1407_v62 = vadd.f32 1e-05, %v1406_v61 }
 0x979   : > { %2236 = vrsqrt.f32 %v1407_v62 }
 0x983   : > { %v2237_v63 = vpop.eup %2236 }
 0x984   : > { %v1409_v2 = vmul.f32 %v2237_v63, %v1401_v55 }
 0x986   : > { %v1416_v4 = vmul.f32 %v1863_v1, %v1409_v2 }
 0x988   : > { %v1423_v5 = vadd.f32 %v1864_v3, %v1416_v4 }
 0x98a   : > { %v1424_v6 = vpack.c.bf16 %v1423_v5, %v1423_v5 }
 0x98c   : > { %2006 = vmatmul.mubr.msk.bf16.vlgmr.msra.gmra.mrb[32].mxu1 %vm618_vm0, %v1424_v6 }
 0xa5f   : > { %v1485_v16 = vpop.f32.mrb[32].mxu1 }
 0xa60   : > { %v1486_v17 = vadd.f32 %v1865_v15, %v1485_v16  ;;  %v2007_v18 = vpop.f32.mrb[33].mxu1 }
 0xa61   : > { %v1488_v19 = vpop.f32.mrb[34].mxu1 }
 0xa62   : > { %v1492_v20 = vmul.f32 0.044715, %v1486_v17  ;;  %v2008_v21 = vpop.f32.mrb[35].mxu1  ;;  %v1491_v28 = vmul.f32 0.5, %v1486_v17 }
 0xa64   : > { %v1493_v22 = vmul.f32 %v1492_v20, %v1486_v17 }
 0xa66   : > { %v1494_v23 = vmul.f32 %v1493_v22, %v1486_v17 }
 0xa68   : > { %v1495_v24 = vadd.f32 %v1494_v23, %v1486_v17 }
 0xa6a   : > { %v1496_v25 = vmul.f32 0.7978846, %v1495_v24 }
 0xa6c   : > { %2238 = vtanh.f32 %v1496_v25 }
 0xa76   : > { %v2239_v26 = vpop.eup %2238 }
 0xa77   : > { %v1498_v29 = vadd.f32 1.0, %v2239_v26 }
 0xa79   : > { %v1499_v30 = vmul.f32 %v1498_v29, %v1491_v28 }
 0xa7b   : > { %v1500_v8 = vpack.c.bf16 %v1499_v30, %v1499_v30 }
 0xa7d   : > { %2026 = vmatmul.mubr.bf16.vlgmr.msra.gmra.mrb[20].mxu0 %v1500_v8 }
 0xb50   : > { %v1606_v31 = vpop.f32.mrb[20].mxu0 }
 0xb51   : > { %v1607_v33 = vadd.f32 %v1869_v27, %v1606_v31  ;;  %v2027_v34 = vpop.f32.mrb[21].mxu0 }
 0xb52   : > { %v1609_v36 = vpop.f32.mrb[22].mxu0 }
 0xb53   : > { %v1612_v37 = vadd.f32 %v1607_v33, %v3309_v51  ;;  %v2028_v38 = vpop.f32.mrb[23].mxu0 }
 0xb55   : > { %1613 = vst.msk [vmem:[%s613_s30] sm:$0xff] %vm618_vm0, %v1612_v37 }
 0xb56   : > { %2619 = shalt.err (!%p2616_p7)
}
 0xb57   : > { %s2620_s19 = scalar_lea.hbm %s3331_s20, 128  ;;  %s2624_s17 = scalar_lea.hbm %s3435_s24, 256 }
 0xb58   : > { %p2621_p6 = scmp.ne.s32.totalorder %s3331_s20, %s2620_s19  ;;  %p2625_p13 = scmp.lt.u32.totalorder %s3331_s20, %s3435_s24 }
 0xb59   : > { %p2626_p1 = scmp.lt.u32.totalorder %s2624_s17, %s2620_s19  ;;  %p2628_p2 = scmp.lt.u32.totalorder %s2620_s19, %s3331_s20 }
 0xb5a   : > { %p2622_p9 = pnand %p2621_p6, %p3436_p0 }
 0xb5b   : > { %p2627_p3 = por %p2626_p1, %p2625_p13 }
 0xb5c   : > { %p2623_p4 = pneg %p2622_p9 }
 0xb5d   : > { %p2629_p10 = por %p2628_p2, %p2627_p3 }
 0xb5f   : > { %p2630_p11 = pnand %p2629_p10, %p2623_p4 }
 0xb61   : > { %2633 = shalt.err (!%p2630_p11)
}
 0xb62   : > { %2079 = dma.vmem_to_hbm [thread:$0]  (%p3436_p0), %s3333_s2, 128, %s3331_s20, %s1615_s0  }
 0xb63 PF: > { %s1640_s15 = sand.u32 1, %s2684_s25   ;;  %p3437_p12 = scmp.ne.s32.totalorder %s3417_s21, 0 }
 0xb64   : > { %p3438_p8 = scmp.ge.s32.totalorder %s2696_s28, 2  ;;  %s1641_s13 = scalar_lea.sflag [#allocation4], %s1640_s15 }
 0xb66   : > { %p2123_p5 = pnand %p3438_p8, %p3437_p12 }
 0xb68   : > { %2679 = dma.done.wait (!%p2123_p5), %s1641_s13, 128  }
 0xb69   : > { %2681 = vsyncadd (!%p2123_p5), %s1641_s13, 4294967168  ;;  %p32_p7 = scmp.ge.s32.totalorder %s3089_s18, 4   ;;  %s3439_s25 = smov %s2688_s26 }
 0xb6a   : > { %s3440_s26 = smov %s2692_s27  ;;  %s3441_s27 = smov %s3100_s29 }
 0xb6b   : > { %s3442_s28 = smov %s3089_s18  ;;  %34 = sbr.rel (!%p32_p7) target bundleno = 17 (0x11), region = 165 }
 0xb72   :  { %1646 = vsyncpa [#allocation3], 1 }
 0xb73   :  { %1648 = vsyncpa [#allocation3 + $0x1], 1 }
 0xb74   :  { %1649 = vsyncpa [#allocation6], 1 }
 0xb75   :  { %1650 = vsyncpa [#allocation9], 1 }
 0xb76   :  { %1651 = vsyncpa [#allocation12], 1 }
 0xb77   :  { %1652 = vsyncpa [#allocation15], 1 }
 0xb78   :  { %1653 = vsyncpa [#allocation18], 1 }
 0xb79   :  { %1654 = vsyncpa [#allocation21], 1 }
 0xb7a   :  { %1655 = vsyncpa [#allocation4], 1 }
 0xb7b   :  { %1657 = vsyncpa [#allocation4 + $0x1], 1 }

</bundles_post_ra>
